<compile_context>
chip_gen: v7x
topology: tpu7x:2x2x1
jax: 0.10.0
libtpu: 0.0.40
codegen_flags: <defaults>
</compile_context>

<pallas_src>
import functools

import jax
import jax.numpy as jnp
from jax.experimental import pallas as pl
from jax.experimental.pallas import tpu as pltpu

GCN_DEPTH = 2
ALPHA = 0.05
_LANE = 128


def _round_up(x, m):
    return ((x + m - 1) // m) * m


def decoder_kernel(x_ref, h0_ref, adj_ref,
                   wx3_ref, wzrh_ref, bzr_ref,
                   wch_ref, bc_ref,
                   wfc_ref, bfc_ref,
                   h_out_ref, y_ref, sim_ref,
                   *, Bb, N, H, C_in, depth, alpha, task_level):
    R = Bb * N

    # Loaded once per batch block (grid has no task axis any more).
    adj = adj_ref[...]                                # (R, R) bf16 block-diag
    h = h0_ref[...].reshape(R, H)                     # (R, H) f32
    x_all = x_ref[...]                                # (Bb, task_level, N, C_in) f32

    def prop_chain_cat(v0):
        """Lane-concat of mixprop hops [v0, v1, .., v_depth], bf16, (R, (depth+1)*F).

        Block-diagonal adj @ (R, F) == per-batch adjacency propagation, so each
        hop is a single MXU call (bf16 in, f32 accumulate)."""
        feats = [v0]
        cur = v0
        for _ in range(depth):
            cur = alpha * v0 + (1.0 - alpha) * jnp.dot(
                adj, cur.astype(jnp.bfloat16), preferred_element_type=jnp.float32)
            feats.append(cur)
        return jnp.concatenate(feats, axis=-1).astype(jnp.bfloat16)

    # Task-level recurrence fully unrolled in-kernel (task_level is tiny).
    for t in range(task_level):
        x = x_all[:, t].reshape(R, C_in)               # (R, C_in) f32

        px = prop_chain_cat(x)                         # (R, D1*C_in) bf16
        ph = prop_chain_cat(h)                         # (R, D1*H)    bf16

        # Fused x-path contribution to [z | r | c]: one K-stacked MXU call.
        x3 = jnp.dot(px, wx3_ref[...],
                     preferred_element_type=jnp.float32)          # (R, 3H) f32

        # Fused z|r gate: one K-stacked MXU call for the h path.
        zr = x3[:, :2 * H] + jnp.dot(ph, wzrh_ref[...],
                                     preferred_element_type=jnp.float32)
        zr = zr + bzr_ref[...]
        z = jax.nn.sigmoid(zr[:, :H])
        r = jax.nn.sigmoid(zr[:, H:])

        prh = prop_chain_cat(r * h)                    # (R, D1*H) bf16
        c = x3[:, 2 * H:] + jnp.dot(prh, wch_ref[...],
                                    preferred_element_type=jnp.float32)
        cand = jnp.tanh(c + bc_ref[...])

        h_new = z * h + (1.0 - z) * cand               # (R, H) f32

        # fc_final (1x1 conv == per-node matmul).  Weights are lane-padded to
        # 128 so this store is lane-dense instead of a masked partial store.
        y = jnp.dot(h_new.astype(jnp.bfloat16), wfc_ref[...],
                    preferred_element_type=jnp.float32) + bfc_ref[...]
        y_ref[:, t, :, :] = y.reshape(Bb, N, -1)

        # TODO(synk): MGRUCell `similarity` reconstructed as per-batch mean of
        # per-node cosine similarity between the old and new hidden states.
        num = jnp.sum(h * h_new, axis=-1, keepdims=True)
        den = (jnp.sum(h * h, axis=-1, keepdims=True) *
               jnp.sum(h_new * h_new, axis=-1, keepdims=True))
        sim_node = num * jax.lax.rsqrt(den + 1e-12)    # (R, 1) f32
        for b in range(Bb):
            m = jnp.sum(sim_node[b * N:(b + 1) * N, :], axis=0,
                        keepdims=True) * (1.0 / N)     # (1, 1)
            sim_ref[b, t, :, :] = jnp.broadcast_to(m, (1, _LANE))

        h = h_new

    # Hidden state written back once, after the whole task-level recurrence.
    h_out_ref[...] = h.reshape(Bb, N, H)


def _num_tensorcores():
    """TensorCores per chip: v7x has 2, v5e/v6e have 1 (fallback: 1)."""
    try:
        kind = jax.devices()[0].device_kind.lower().replace(" ", "")
    except Exception:
        return 1
    return 2 if ("v7" in kind or "tpu7" in kind) else 1


def _pick_batch_block(B):
    # v7x: split the batch over 2 parallel blocks (one per TensorCore).
    # Single-TC chips (v5e/v6e): one block with every batch stacked on
    # sublanes — better MXU fill, no redundant sequential grid steps.
    if _num_tensorcores() >= 2 and B >= 2 and B % 2 == 0:
        return B // 2
    return B


def _make_cost_estimate(B, Bb, N, C_in, H, out_pad, task_level, depth):
    d1 = depth + 1
    R = Bb * N
    num_blocks = B // Bb
    hop_flops = 2 * depth * R * R * (C_in + 2 * H)           # px/ph/prh chains
    gate_flops = (2 * R * (d1 * C_in) * (3 * H)              # fused x path
                  + 2 * R * (d1 * H) * (2 * H)               # z|r h path
                  + 2 * R * (d1 * H) * H                     # candidate h path
                  + 2 * R * H * out_pad)                     # fc_final
    flops = num_blocks * task_level * (hop_flops + gate_flops)
    transcendentals = num_blocks * task_level * R * (3 * H + 1)
    bytes_accessed = (
        4 * B * task_level * N * C_in                        # x
        + 4 * 2 * B * N * H                                  # h0 in + h out
        + 4 * B * task_level * N * out_pad                   # y
        + 4 * B * task_level * _LANE                         # sim
        + 2 * num_blocks * R * R                             # bf16 adj (per block)
        + 2 * d1 * (C_in + H) * 3 * H                        # bf16 gate weights
        + 2 * H * out_pad + 4 * (3 * H + out_pad))           # fc weights + biases
    return pl.CostEstimate(flops=flops, transcendentals=transcendentals,
                           bytes_accessed=bytes_accessed)


def make_decoder_call(B, Bb, N, C_in, H, out_pad, task_level,
                      depth=GCN_DEPTH, alpha=ALPHA):
    assert B % Bb == 0
    num_blocks = B // Bb
    D1 = depth + 1
    R = Bb * N
    kernel = functools.partial(decoder_kernel, Bb=Bb, N=N, H=H, C_in=C_in,
                               depth=depth, alpha=alpha, task_level=task_level)
    grid_spec = pltpu.PrefetchScalarGridSpec(
        num_scalar_prefetch=0,
        grid=(num_blocks,),                     # task recurrence is in-kernel
        in_specs=[
            pl.BlockSpec((Bb, task_level, N, C_in), lambda bb: (bb, 0, 0, 0)),  # x
            pl.BlockSpec((Bb, N, H),                lambda bb: (bb, 0, 0)),     # h0
            pl.BlockSpec((R, R),                    lambda bb: (0, 0)),         # adj (block-diag bf16)
            pl.BlockSpec((D1 * C_in, 3 * H),        lambda bb: (0, 0)),         # [Wzr_x | Wc_x]
            pl.BlockSpec((D1 * H, 2 * H),           lambda bb: (0, 0)),         # Wzr_h
            pl.BlockSpec((1, 2 * H),                lambda bb: (0, 0)),         # bzr
            pl.BlockSpec((D1 * H, H),               lambda bb: (0, 0)),         # Wc_h
            pl.BlockSpec((1, H),                    lambda bb: (0, 0)),         # bc
            pl.BlockSpec((H, out_pad),              lambda bb: (0, 0)),         # Wfc (lane-padded)
            pl.BlockSpec((1, out_pad),              lambda bb: (0, 0)),         # bfc
        ],
        out_specs=[
            pl.BlockSpec((Bb, N, H),                   lambda bb: (bb, 0, 0)),      # h_out
            pl.BlockSpec((Bb, task_level, N, out_pad), lambda bb: (bb, 0, 0, 0)),   # y
            pl.BlockSpec((Bb, task_level, 1, _LANE),   lambda bb: (bb, 0, 0, 0)),   # sim
        ],
    )
    # NOTE: at production graph sizes pass a bf16 adjacency tile and set an
    # explicit pltpu.CompilerParams(vmem_limit_bytes=...) (v7x scoped default
    # is 32 MiB); at these shapes everything fits comfortably.
    return pl.pallas_call(
        kernel,
        grid_spec=grid_spec,
        out_shape=(
            jax.ShapeDtypeStruct((B, N, H), jnp.float32),
            jax.ShapeDtypeStruct((B, task_level, N, out_pad), jnp.float32),
            jax.ShapeDtypeStruct((B, task_level, 1, _LANE), jnp.float32),
        ),
        cost_estimate=_make_cost_estimate(B, Bb, N, C_in, H, out_pad,
                                          task_level, depth),
        compiler_params=pltpu.CompilerParams(
            dimension_semantics=("parallel",)),
    )


@functools.partial(jax.jit, static_argnames=("task_level",))
def decoder_forward(decoder_input, target_time, hidden_state, adj, params,
                    task_level=2):
    """Mirrors Decoder.forward in eval mode (no curriculum sampling, dropout off).

    decoder_input: (B, N, T, C_in)  -- only used for its shape, as in PyTorch
    target_time:   (B, N, T, C_in)
    hidden_state:  (B, RNN_layer=1, N, H)
    adj:           (N, N) normalized adjacency
    returns (outputs_final (B,N,task_level,C_out), hidden_concat (B,N,H), sims)
    """
    B, N, T, C_in = decoder_input.shape
    H = params["wfc"].shape[0]
    C_out = params["wfc"].shape[1]
    out_pad = _round_up(C_out, _LANE)
    D1 = GCN_DEPTH + 1
    G = C_in + H

    # ---- weight re-packing (pure XLA, fused under jit) ---------------------
    # Fuse the z|r gates, K-stack the per-hop x/h row blocks of every gate so
    # the kernel issues one MXU call per gate path (and a single fused
    # [Wzr_x | Wc_x] call for the x path), pad the conv head to a lane-dense
    # 128-wide output, and cast all MXU-side weights to bf16.
    wzr = jnp.concatenate([params["wz"], params["wr"]], axis=1)          # (gdim, 2H)
    bzr = jnp.concatenate([params["bz"], params["br"]], axis=1)          # (1, 2H)
    wc = params["wc"]
    wzr_x = jnp.concatenate([wzr[k * G:k * G + C_in] for k in range(D1)], 0)
    wzr_h = jnp.concatenate([wzr[k * G + C_in:(k + 1) * G] for k in range(D1)], 0)
    wc_x = jnp.concatenate([wc[k * G:k * G + C_in] for k in range(D1)], 0)
    wc_h = jnp.concatenate([wc[k * G + C_in:(k + 1) * G] for k in range(D1)], 0)
    w_x3 = jnp.concatenate([wzr_x, wc_x], axis=1)                         # (D1*C_in, 3H)
    wfc_pad = jnp.pad(params["wfc"], ((0, 0), (0, out_pad - C_out)))
    bfc_pad = jnp.pad(params["bfc"], ((0, 0), (0, out_pad - C_out)))

    bf16 = jnp.bfloat16
    # Only the first `task_level` target-time slices are ever consumed.
    tt = jnp.transpose(target_time, (0, 2, 1, 3))[:, :task_level]         # (B, TL, N, C_in)
    h0 = hidden_state[:, 0, :, :]                                         # single RNN layer

    Bb = _pick_batch_block(B)
    # Block-diagonal adjacency: applying it to sublane-stacked (Bb*N, F)
    # features is exactly per-batch adjacency propagation, so each mixprop hop
    # is one MXU call with no per-batch loop/concat inside the kernel.
    # Cast once here (bf16) so the kernel never re-casts adj.
    adj_bd = jnp.kron(jnp.eye(Bb, dtype=adj.dtype), adj).astype(bf16)

    call = make_decoder_call(B, Bb, N, C_in, H, out_pad, task_level)
    h_out, y_pad, sim_pad = call(
        tt, h0, adj_bd,
        w_x3.astype(bf16), wzr_h.astype(bf16), bzr,
        wc_h.astype(bf16), params["bc"],
        wfc_pad.astype(bf16), bfc_pad)

    outputs_final = jnp.transpose(y_pad[:, :, :, :C_out], (0, 2, 1, 3))
    sims = [sim_pad[:, i, 0, 0] for i in range(task_level)]               # list of (B,)
    # decoder_input = act(cur_out) in the PyTorch code is overwritten on the
    # next task-level iteration (RNN_layer == 1), so it affects no output.
    return outputs_final, h_out, sims


def _init_params(key, C_in, H, C_out):
    gdim = (GCN_DEPTH + 1) * (C_in + H)
    ks = jax.random.split(key, 8)
    scale = 0.1
    return {
        "wz":  scale * jax.random.normal(ks[0], (gdim, H), jnp.float32),
        "bz":  jnp.zeros((1, H), jnp.float32),
        "wr":  scale * jax.random.normal(ks[1], (gdim, H), jnp.float32),
        "br":  jnp.zeros((1, H), jnp.float32),
        "wc":  scale * jax.random.normal(ks[2], (gdim, H), jnp.float32),
        "bc":  jnp.zeros((1, H), jnp.float32),
        "wfc": scale * jax.random.normal(ks[3], (H, C_out), jnp.float32),
        "bfc": 0.01 * jnp.ones((1, C_out), jnp.float32),
    }


def _ring_adj(N):
    eye = jnp.eye(N, dtype=jnp.float32)
    ring = jnp.roll(eye, 1, axis=1) + jnp.roll(eye, -1, axis=1)
    a = eye + ring
    d = jnp.sum(a, axis=1)
    d_inv_sqrt = 1.0 / jnp.sqrt(d)
    return a * d_inv_sqrt[:, None] * d_inv_sqrt[None, :]


if __name__ == "__main__":
    B, N, T, C_in = 2, 16, 8, 4
    H, C_out = 32, 4
    task_level = 2

    key = jax.random.PRNGKey(0)
    k0, k1, k2, kp = jax.random.split(key, 4)

    decoder_input = jax.random.normal(k0, (B, N, T, C_in), jnp.float32)
    target_time = jax.random.normal(k1, (B, N, T, C_in), jnp.float32)
    hidden_state = jax.random.normal(k2, (B, 1, N, H), jnp.float32)
    adj = _ring_adj(N)
    params = _init_params(kp, C_in, H, C_out)

    outputs_final, hidden_concat, sims = decoder_forward(
        decoder_input, target_time, hidden_state, adj, params,
        task_level=task_level)

    jax.block_until_ready(outputs_final)
    jax.block_until_ready(hidden_concat)
    for s in sims:
        jax.block_until_ready(s)

    assert outputs_final.shape == (B, N, task_level, C_out)
    assert hidden_concat.shape == (B, N, H)
    assert len(sims) == task_level and all(s.shape == (B,) for s in sims)
    assert bool(jnp.all(jnp.isfinite(outputs_final)))
    assert bool(jnp.all(jnp.isfinite(hidden_concat)))
    assert all(bool(jnp.all(jnp.isfinite(s))) for s in sims)
    print("KERNEL_OK")
</pallas_src>

<mosaic_0001>
module attributes {stable_mosaic.version = 11 : i64} {
  func.func @decoder_kernel(%arg0: i32, %arg1: memref<2x2x16x4xf32, #tpu.memory_space<vmem>>, %arg2: memref<2x16x32xf32, #tpu.memory_space<vmem>>, %arg3: memref<32x32xbf16, #tpu.memory_space<vmem>>, %arg4: memref<12x96xbf16, #tpu.memory_space<vmem>>, %arg5: memref<96x64xbf16, #tpu.memory_space<vmem>>, %arg6: memref<1x64xf32, #tpu.memory_space<vmem>>, %arg7: memref<96x32xbf16, #tpu.memory_space<vmem>>, %arg8: memref<1x32xf32, #tpu.memory_space<vmem>>, %arg9: memref<32x128xbf16, #tpu.memory_space<vmem>>, %arg10: memref<1x128xf32, #tpu.memory_space<vmem>>, %arg11: memref<2x16x32xf32, #tpu.memory_space<vmem>>, %arg12: memref<2x2x16x128xf32, #tpu.memory_space<vmem>>, %arg13: memref<2x2x1x128xf32, #tpu.memory_space<vmem>>) attributes {dimension_semantics = [#tpu.dimension_semantics<parallel>], iteration_bounds = array<i64: 1>, scalar_prefetch = 0 : i64, scratch_operands = 0 : i64, tpu.core_type = #tpu.core_type<tc>, window_params = [{transform_indices = @transform_0, window_bounds = array<i64: 2, 2, 16, 4>}, {transform_indices = @transform_1, window_bounds = array<i64: 2, 16, 32>}, {pipeline_mode = #tpu.pipeline_mode<synchronous>, transform_indices = @transform_2, window_bounds = array<i64: 32, 32>}, {pipeline_mode = #tpu.pipeline_mode<synchronous>, transform_indices = @transform_3, window_bounds = array<i64: 12, 96>}, {pipeline_mode = #tpu.pipeline_mode<synchronous>, transform_indices = @transform_4, window_bounds = array<i64: 96, 64>}, {pipeline_mode = #tpu.pipeline_mode<synchronous>, transform_indices = @transform_5, window_bounds = array<i64: 1, 64>}, {pipeline_mode = #tpu.pipeline_mode<synchronous>, transform_indices = @transform_6, window_bounds = array<i64: 96, 32>}, {pipeline_mode = #tpu.pipeline_mode<synchronous>, transform_indices = @transform_7, window_bounds = array<i64: 1, 32>}, {pipeline_mode = #tpu.pipeline_mode<synchronous>, transform_indices = @transform_8, window_bounds = array<i64: 32, 128>}, {pipeline_mode = #tpu.pipeline_mode<synchronous>, transform_indices = @transform_9, window_bounds = array<i64: 1, 128>}, {transform_indices = @transform_10, window_bounds = array<i64: 2, 16, 32>}, {transform_indices = @transform_11, window_bounds = array<i64: 2, 2, 16, 128>}, {transform_indices = @transform_12, window_bounds = array<i64: 2, 2, 1, 128>}]} {
    %c0 = arith.constant 0 : index
    %c0_0 = arith.constant 0 : index
    %0 = vector.load %arg3[%c0, %c0_0] : memref<32x32xbf16, #tpu.memory_space<vmem>>, vector<32x32xbf16>
    %c0_1 = arith.constant 0 : index
    %c0_2 = arith.constant 0 : index
    %c0_3 = arith.constant 0 : index
    %1 = vector.load %arg2[%c0_1, %c0_2, %c0_3] : memref<2x16x32xf32, #tpu.memory_space<vmem>>, vector<2x16x32xf32>
    %2 = vector.shape_cast %1 : vector<2x16x32xf32> to vector<32x32xf32>
    %c0_4 = arith.constant 0 : index
    %c0_5 = arith.constant 0 : index
    %c0_6 = arith.constant 0 : index
    %c0_7 = arith.constant 0 : index
    %3 = vector.load %arg1[%c0_4, %c0_5, %c0_6, %c0_7] : memref<2x2x16x4xf32, #tpu.memory_space<vmem>>, vector<2x2x16x4xf32>
    %4 = vector.extract_strided_slice %3 {offsets = [0, 0, 0, 0], sizes = [2, 1, 16, 4], strides = [1, 1, 1, 1]} : vector<2x2x16x4xf32> to vector<2x1x16x4xf32>
    %5 = vector.shape_cast %4 : vector<2x1x16x4xf32> to vector<2x16x4xf32>
    %6 = vector.shape_cast %5 : vector<2x16x4xf32> to vector<32x4xf32>
    %cst = arith.constant 5.000000e-02 : f32
    %7 = vector.broadcast %cst : f32 to vector<32x4xf32>
    %8 = arith.mulf %7, %6 : vector<32x4xf32>
    %9 = arith.truncf %6 : vector<32x4xf32> to vector<32x4xbf16>
    %cst_8 = arith.constant dense<0.000000e+00> : vector<32x4xf32>
    %10 = tpu.matmul %0, %9, %cst_8 {dimension_numbers = #tpu.dot_dimension_numbers<[1], [0], [0], [1], [0, 0, 1, 1], [], []>} : vector<32x32xbf16>, vector<32x4xbf16>, vector<32x4xf32> -> vector<32x4xf32>
    %cst_9 = arith.constant 0.949999988 : f32
    %11 = vector.broadcast %cst_9 : f32 to vector<32x4xf32>
    %12 = arith.mulf %11, %10 : vector<32x4xf32>
    %13 = arith.addf %8, %12 : vector<32x4xf32>
    %cst_10 = arith.constant 5.000000e-02 : f32
    %14 = vector.broadcast %cst_10 : f32 to vector<32x4xf32>
    %15 = arith.mulf %14, %6 : vector<32x4xf32>
    %16 = arith.truncf %13 : vector<32x4xf32> to vector<32x4xbf16>
    %cst_11 = arith.constant dense<0.000000e+00> : vector<32x4xf32>
    %17 = tpu.matmul %0, %16, %cst_11 {dimension_numbers = #tpu.dot_dimension_numbers<[1], [0], [0], [1], [0, 0, 1, 1], [], []>} : vector<32x32xbf16>, vector<32x4xbf16>, vector<32x4xf32> -> vector<32x4xf32>
    %cst_12 = arith.constant 0.949999988 : f32
    %18 = vector.broadcast %cst_12 : f32 to vector<32x4xf32>
    %19 = arith.mulf %18, %17 : vector<32x4xf32>
    %20 = arith.addf %15, %19 : vector<32x4xf32>
    %21 = tpu.concatenate %6, %13, %20 in 1 : vector<32x4xf32>, vector<32x4xf32>, vector<32x4xf32> -> vector<32x12xf32>
    %22 = arith.truncf %21 : vector<32x12xf32> to vector<32x12xbf16>
    %cst_13 = arith.constant 5.000000e-02 : f32
    %23 = vector.broadcast %cst_13 : f32 to vector<32x32xf32>
    %24 = arith.mulf %23, %2 : vector<32x32xf32>
    %25 = arith.truncf %2 : vector<32x32xf32> to vector<32x32xbf16>
    %cst_14 = arith.constant dense<0.000000e+00> : vector<32x32xf32>
    %26 = tpu.matmul %0, %25, %cst_14 {dimension_numbers = #tpu.dot_dimension_numbers<[1], [0], [0], [1], [0, 0, 1, 1], [], []>} : vector<32x32xbf16>, vector<32x32xbf16>, vector<32x32xf32> -> vector<32x32xf32>
    %cst_15 = arith.constant 0.949999988 : f32
    %27 = vector.broadcast %cst_15 : f32 to vector<32x32xf32>
    %28 = arith.mulf %27, %26 : vector<32x32xf32>
    %29 = arith.addf %24, %28 : vector<32x32xf32>
    %cst_16 = arith.constant 5.000000e-02 : f32
    %30 = vector.broadcast %cst_16 : f32 to vector<32x32xf32>
    %31 = arith.mulf %30, %2 : vector<32x32xf32>
    %32 = arith.truncf %29 : vector<32x32xf32> to vector<32x32xbf16>
    %cst_17 = arith.constant dense<0.000000e+00> : vector<32x32xf32>
    %33 = tpu.matmul %0, %32, %cst_17 {dimension_numbers = #tpu.dot_dimension_numbers<[1], [0], [0], [1], [0, 0, 1, 1], [], []>} : vector<32x32xbf16>, vector<32x32xbf16>, vector<32x32xf32> -> vector<32x32xf32>
    %cst_18 = arith.constant 0.949999988 : f32
    %34 = vector.broadcast %cst_18 : f32 to vector<32x32xf32>
    %35 = arith.mulf %34, %33 : vector<32x32xf32>
    %36 = arith.addf %31, %35 : vector<32x32xf32>
    %37 = tpu.concatenate %2, %29, %36 in 1 : vector<32x32xf32>, vector<32x32xf32>, vector<32x32xf32> -> vector<32x96xf32>
    %38 = arith.truncf %37 : vector<32x96xf32> to vector<32x96xbf16>
    %c0_19 = arith.constant 0 : index
    %c0_20 = arith.constant 0 : index
    %39 = vector.load %arg4[%c0_19, %c0_20] : memref<12x96xbf16, #tpu.memory_space<vmem>>, vector<12x96xbf16>
    %cst_21 = arith.constant dense<0.000000e+00> : vector<32x96xf32>
    %40 = tpu.matmul %22, %39, %cst_21 {dimension_numbers = #tpu.dot_dimension_numbers<[1], [0], [0], [1], [0, 0, 1, 1], [], []>} : vector<32x12xbf16>, vector<12x96xbf16>, vector<32x96xf32> -> vector<32x96xf32>
    %41 = vector.extract_strided_slice %40 {offsets = [0, 0], sizes = [32, 64], strides = [1, 1]} : vector<32x96xf32> to vector<32x64xf32>
    %c0_22 = arith.constant 0 : index
    %c0_23 = arith.constant 0 : index
    %42 = vector.load %arg5[%c0_22, %c0_23] : memref<96x64xbf16, #tpu.memory_space<vmem>>, vector<96x64xbf16>
    %cst_24 = arith.constant dense<0.000000e+00> : vector<32x64xf32>
    %43 = tpu.matmul %38, %42, %cst_24 {dimension_numbers = #tpu.dot_dimension_numbers<[1], [0], [0], [1], [0, 0, 1, 1], [], []>} : vector<32x96xbf16>, vector<96x64xbf16>, vector<32x64xf32> -> vector<32x64xf32>
    %44 = arith.addf %41, %43 : vector<32x64xf32>
    %c0_25 = arith.constant 0 : index
    %c0_26 = arith.constant 0 : index
    %45 = vector.load %arg6[%c0_25, %c0_26] : memref<1x64xf32, #tpu.memory_space<vmem>>, vector<1x64xf32>
    %46 = vector.broadcast %45 : vector<1x64xf32> to vector<32x64xf32>
    %47 = arith.addf %44, %46 : vector<32x64xf32>
    %48 = vector.extract_strided_slice %47 {offsets = [0, 0], sizes = [32, 32], strides = [1, 1]} : vector<32x64xf32> to vector<32x32xf32>
    %49 = arith.negf %48 : vector<32x32xf32>
    %50 = math.exp %49 : vector<32x32xf32>
    %cst_27 = arith.constant 1.000000e+00 : f32
    %51 = vector.broadcast %cst_27 : f32 to vector<32x32xf32>
    %52 = arith.addf %51, %50 : vector<32x32xf32>
    %53 = arith.divf %51, %52 : vector<32x32xf32>
    %54 = vector.extract_strided_slice %47 {offsets = [0, 32], sizes = [32, 32], strides = [1, 1]} : vector<32x64xf32> to vector<32x32xf32>
    %55 = arith.negf %54 : vector<32x32xf32>
    %56 = math.exp %55 : vector<32x32xf32>
    %cst_28 = arith.constant 1.000000e+00 : f32
    %57 = vector.broadcast %cst_28 : f32 to vector<32x32xf32>
    %58 = arith.addf %57, %56 : vector<32x32xf32>
    %59 = arith.divf %57, %58 : vector<32x32xf32>
    %60 = arith.mulf %59, %2 : vector<32x32xf32>
    %cst_29 = arith.constant 5.000000e-02 : f32
    %61 = vector.broadcast %cst_29 : f32 to vector<32x32xf32>
    %62 = arith.mulf %61, %60 : vector<32x32xf32>
    %63 = arith.truncf %60 : vector<32x32xf32> to vector<32x32xbf16>
    %cst_30 = arith.constant dense<0.000000e+00> : vector<32x32xf32>
    %64 = tpu.matmul %0, %63, %cst_30 {dimension_numbers = #tpu.dot_dimension_numbers<[1], [0], [0], [1], [0, 0, 1, 1], [], []>} : vector<32x32xbf16>, vector<32x32xbf16>, vector<32x32xf32> -> vector<32x32xf32>
    %cst_31 = arith.constant 0.949999988 : f32
    %65 = vector.broadcast %cst_31 : f32 to vector<32x32xf32>
    %66 = arith.mulf %65, %64 : vector<32x32xf32>
    %67 = arith.addf %62, %66 : vector<32x32xf32>
    %cst_32 = arith.constant 5.000000e-02 : f32
    %68 = vector.broadcast %cst_32 : f32 to vector<32x32xf32>
    %69 = arith.mulf %68, %60 : vector<32x32xf32>
    %70 = arith.truncf %67 : vector<32x32xf32> to vector<32x32xbf16>
    %cst_33 = arith.constant dense<0.000000e+00> : vector<32x32xf32>
    %71 = tpu.matmul %0, %70, %cst_33 {dimension_numbers = #tpu.dot_dimension_numbers<[1], [0], [0], [1], [0, 0, 1, 1], [], []>} : vector<32x32xbf16>, vector<32x32xbf16>, vector<32x32xf32> -> vector<32x32xf32>
    %cst_34 = arith.constant 0.949999988 : f32
    %72 = vector.broadcast %cst_34 : f32 to vector<32x32xf32>
    %73 = arith.mulf %72, %71 : vector<32x32xf32>
    %74 = arith.addf %69, %73 : vector<32x32xf32>
    %75 = tpu.concatenate %60, %67, %74 in 1 : vector<32x32xf32>, vector<32x32xf32>, vector<32x32xf32> -> vector<32x96xf32>
    %76 = arith.truncf %75 : vector<32x96xf32> to vector<32x96xbf16>
    %77 = vector.extract_strided_slice %40 {offsets = [0, 64], sizes = [32, 32], strides = [1, 1]} : vector<32x96xf32> to vector<32x32xf32>
    %c0_35 = arith.constant 0 : index
    %c0_36 = arith.constant 0 : index
    %78 = vector.load %arg7[%c0_35, %c0_36] : memref<96x32xbf16, #tpu.memory_space<vmem>>, vector<96x32xbf16>
    %cst_37 = arith.constant dense<0.000000e+00> : vector<32x32xf32>
    %79 = tpu.matmul %76, %78, %cst_37 {dimension_numbers = #tpu.dot_dimension_numbers<[1], [0], [0], [1], [0, 0, 1, 1], [], []>} : vector<32x96xbf16>, vector<96x32xbf16>, vector<32x32xf32> -> vector<32x32xf32>
    %80 = arith.addf %77, %79 : vector<32x32xf32>
    %c0_38 = arith.constant 0 : index
    %c0_39 = arith.constant 0 : index
    %81 = vector.load %arg8[%c0_38, %c0_39] : memref<1x32xf32, #tpu.memory_space<vmem>>, vector<1x32xf32>
    %82 = vector.broadcast %81 : vector<1x32xf32> to vector<32x32xf32>
    %83 = arith.addf %80, %82 : vector<32x32xf32>
    %84 = math.tanh %83 : vector<32x32xf32>
    %85 = arith.mulf %53, %2 : vector<32x32xf32>
    %cst_40 = arith.constant 1.000000e+00 : f32
    %86 = vector.broadcast %cst_40 : f32 to vector<32x32xf32>
    %87 = arith.subf %86, %53 : vector<32x32xf32>
    %88 = arith.mulf %87, %84 : vector<32x32xf32>
    %89 = arith.addf %85, %88 : vector<32x32xf32>
    %90 = arith.truncf %89 : vector<32x32xf32> to vector<32x32xbf16>
    %c0_41 = arith.constant 0 : index
    %c0_42 = arith.constant 0 : index
    %91 = vector.load %arg9[%c0_41, %c0_42] : memref<32x128xbf16, #tpu.memory_space<vmem>>, vector<32x128xbf16>
    %cst_43 = arith.constant dense<0.000000e+00> : vector<32x128xf32>
    %92 = tpu.matmul %90, %91, %cst_43 {dimension_numbers = #tpu.dot_dimension_numbers<[1], [0], [0], [1], [0, 0, 1, 1], [], []>} : vector<32x32xbf16>, vector<32x128xbf16>, vector<32x128xf32> -> vector<32x128xf32>
    %c0_44 = arith.constant 0 : index
    %c0_45 = arith.constant 0 : index
    %93 = vector.load %arg10[%c0_44, %c0_45] : memref<1x128xf32, #tpu.memory_space<vmem>>, vector<1x128xf32>
    %94 = vector.broadcast %93 : vector<1x128xf32> to vector<32x128xf32>
    %95 = arith.addf %92, %94 : vector<32x128xf32>
    %96 = vector.shape_cast %95 : vector<32x128xf32> to vector<2x16x128xf32>
    %c0_46 = arith.constant 0 : index
    %c0_47 = arith.constant 0 : index
    %c0_48 = arith.constant 0 : index
    %c0_49 = arith.constant 0 : index
    %97 = vector.load %arg12[%c0_46, %c0_47, %c0_48, %c0_49] : memref<2x2x16x128xf32, #tpu.memory_space<vmem>>, vector<2x1x16x128xf32>
    %98 = vector.shape_cast %97 : vector<2x1x16x128xf32> to vector<2x16x128xf32>
    %99 = vector.shape_cast %96 : vector<2x16x128xf32> to vector<2x1x16x128xf32>
    tpu.vector_store %arg12[%c0_46, %c0_47, %c0_48, %c0_49], %99 {strides = array<i32>} : memref<2x2x16x128xf32, #tpu.memory_space<vmem>>, vector<2x1x16x128xf32>,
    %100 = arith.mulf %2, %89 : vector<32x32xf32>
    %cst_50 = arith.constant dense<0.000000e+00> : vector<32xf32>
    %101 = vector.multi_reduction <add>, %100, %cst_50 [1] : vector<32x32xf32> to vector<32xf32>
    %102 = vector.shape_cast %101 : vector<32xf32> to vector<32x1xf32>
    %103 = arith.mulf %2, %2 : vector<32x32xf32>
    %cst_51 = arith.constant dense<0.000000e+00> : vector<32xf32>
    %104 = vector.multi_reduction <add>, %103, %cst_51 [1] : vector<32x32xf32> to vector<32xf32>
    %105 = vector.shape_cast %104 : vector<32xf32> to vector<32x1xf32>
    %106 = arith.mulf %89, %89 : vector<32x32xf32>
    %cst_52 = arith.constant dense<0.000000e+00> : vector<32xf32>
    %107 = vector.multi_reduction <add>, %106, %cst_52 [1] : vector<32x32xf32> to vector<32xf32>
    %108 = vector.shape_cast %107 : vector<32xf32> to vector<32x1xf32>
    %109 = arith.mulf %105, %108 : vector<32x1xf32>
    %cst_53 = arith.constant 9.99999996E-13 : f32
    %110 = vector.broadcast %cst_53 : f32 to vector<32x1xf32>
    %111 = arith.addf %109, %110 : vector<32x1xf32>
    %112 = math.rsqrt %111 : vector<32x1xf32>
    %113 = arith.mulf %102, %112 : vector<32x1xf32>
    %114 = vector.extract_strided_slice %113 {offsets = [0, 0], sizes = [16, 1], strides = [1, 1]} : vector<32x1xf32> to vector<16x1xf32>
    %cst_54 = arith.constant dense<0.000000e+00> : vector<1xf32>
    %115 = vector.multi_reduction <add>, %114, %cst_54 [0] : vector<16x1xf32> to vector<1xf32>
    %116 = vector.shape_cast %115 : vector<1xf32> to vector<1x1xf32>
    %cst_55 = arith.constant 6.250000e-02 : f32
    %117 = vector.broadcast %cst_55 : f32 to vector<1x1xf32>
    %118 = arith.mulf %116, %117 : vector<1x1xf32>
    %119 = vector.shape_cast %118 : vector<1x1xf32> to vector<1x1xf32>
    %120 = vector.broadcast %119 : vector<1x1xf32> to vector<1x128xf32>
    %c0_56 = arith.constant 0 : index
    %c0_57 = arith.constant 0 : index
    %c0_58 = arith.constant 0 : index
    %c0_59 = arith.constant 0 : index
    %121 = vector.load %arg13[%c0_56, %c0_57, %c0_58, %c0_59] : memref<2x2x1x128xf32, #tpu.memory_space<vmem>>, vector<1x1x1x128xf32>
    %122 = vector.shape_cast %121 : vector<1x1x1x128xf32> to vector<1x128xf32>
    %123 = vector.shape_cast %120 : vector<1x128xf32> to vector<1x1x1x128xf32>
    tpu.vector_store %arg13[%c0_56, %c0_57, %c0_58, %c0_59], %123 {strides = array<i32>} : memref<2x2x1x128xf32, #tpu.memory_space<vmem>>, vector<1x1x1x128xf32>,
    %124 = vector.extract_strided_slice %113 {offsets = [16, 0], sizes = [16, 1], strides = [1, 1]} : vector<32x1xf32> to vector<16x1xf32>
    %cst_60 = arith.constant dense<0.000000e+00> : vector<1xf32>
    %125 = vector.multi_reduction <add>, %124, %cst_60 [0] : vector<16x1xf32> to vector<1xf32>
    %126 = vector.shape_cast %125 : vector<1xf32> to vector<1x1xf32>
    %cst_61 = arith.constant 6.250000e-02 : f32
    %127 = vector.broadcast %cst_61 : f32 to vector<1x1xf32>
    %128 = arith.mulf %126, %127 : vector<1x1xf32>
    %129 = vector.shape_cast %128 : vector<1x1xf32> to vector<1x1xf32>
    %130 = vector.broadcast %129 : vector<1x1xf32> to vector<1x128xf32>
    %c1 = arith.constant 1 : index
    %c0_62 = arith.constant 0 : index
    %c0_63 = arith.constant 0 : index
    %c0_64 = arith.constant 0 : index
    %131 = vector.load %arg13[%c1, %c0_62, %c0_63, %c0_64] : memref<2x2x1x128xf32, #tpu.memory_space<vmem>>, vector<1x1x1x128xf32>
    %132 = vector.shape_cast %131 : vector<1x1x1x128xf32> to vector<1x128xf32>
    %133 = vector.shape_cast %130 : vector<1x128xf32> to vector<1x1x1x128xf32>
    tpu.vector_store %arg13[%c1, %c0_62, %c0_63, %c0_64], %133 {strides = array<i32>} : memref<2x2x1x128xf32, #tpu.memory_space<vmem>>, vector<1x1x1x128xf32>,
    %134 = vector.extract_strided_slice %3 {offsets = [0, 1, 0, 0], sizes = [2, 1, 16, 4], strides = [1, 1, 1, 1]} : vector<2x2x16x4xf32> to vector<2x1x16x4xf32>
    %135 = vector.shape_cast %134 : vector<2x1x16x4xf32> to vector<2x16x4xf32>
    %136 = vector.shape_cast %135 : vector<2x16x4xf32> to vector<32x4xf32>
    %cst_65 = arith.constant 5.000000e-02 : f32
    %137 = vector.broadcast %cst_65 : f32 to vector<32x4xf32>
    %138 = arith.mulf %137, %136 : vector<32x4xf32>
    %139 = arith.truncf %136 : vector<32x4xf32> to vector<32x4xbf16>
    %cst_66 = arith.constant dense<0.000000e+00> : vector<32x4xf32>
    %140 = tpu.matmul %0, %139, %cst_66 {dimension_numbers = #tpu.dot_dimension_numbers<[1], [0], [0], [1], [0, 0, 1, 1], [], []>} : vector<32x32xbf16>, vector<32x4xbf16>, vector<32x4xf32> -> vector<32x4xf32>
    %cst_67 = arith.constant 0.949999988 : f32
    %141 = vector.broadcast %cst_67 : f32 to vector<32x4xf32>
    %142 = arith.mulf %141, %140 : vector<32x4xf32>
    %143 = arith.addf %138, %142 : vector<32x4xf32>
    %cst_68 = arith.constant 5.000000e-02 : f32
    %144 = vector.broadcast %cst_68 : f32 to vector<32x4xf32>
    %145 = arith.mulf %144, %136 : vector<32x4xf32>
    %146 = arith.truncf %143 : vector<32x4xf32> to vector<32x4xbf16>
    %cst_69 = arith.constant dense<0.000000e+00> : vector<32x4xf32>
    %147 = tpu.matmul %0, %146, %cst_69 {dimension_numbers = #tpu.dot_dimension_numbers<[1], [0], [0], [1], [0, 0, 1, 1], [], []>} : vector<32x32xbf16>, vector<32x4xbf16>, vector<32x4xf32> -> vector<32x4xf32>
    %cst_70 = arith.constant 0.949999988 : f32
    %148 = vector.broadcast %cst_70 : f32 to vector<32x4xf32>
    %149 = arith.mulf %148, %147 : vector<32x4xf32>
    %150 = arith.addf %145, %149 : vector<32x4xf32>
    %151 = tpu.concatenate %136, %143, %150 in 1 : vector<32x4xf32>, vector<32x4xf32>, vector<32x4xf32> -> vector<32x12xf32>
    %152 = arith.truncf %151 : vector<32x12xf32> to vector<32x12xbf16>
    %cst_71 = arith.constant 5.000000e-02 : f32
    %153 = vector.broadcast %cst_71 : f32 to vector<32x32xf32>
    %154 = arith.mulf %153, %89 : vector<32x32xf32>
    %155 = arith.truncf %89 : vector<32x32xf32> to vector<32x32xbf16>
    %cst_72 = arith.constant dense<0.000000e+00> : vector<32x32xf32>
    %156 = tpu.matmul %0, %155, %cst_72 {dimension_numbers = #tpu.dot_dimension_numbers<[1], [0], [0], [1], [0, 0, 1, 1], [], []>} : vector<32x32xbf16>, vector<32x32xbf16>, vector<32x32xf32> -> vector<32x32xf32>
    %cst_73 = arith.constant 0.949999988 : f32
    %157 = vector.broadcast %cst_73 : f32 to vector<32x32xf32>
    %158 = arith.mulf %157, %156 : vector<32x32xf32>
    %159 = arith.addf %154, %158 : vector<32x32xf32>
    %cst_74 = arith.constant 5.000000e-02 : f32
    %160 = vector.broadcast %cst_74 : f32 to vector<32x32xf32>
    %161 = arith.mulf %160, %89 : vector<32x32xf32>
    %162 = arith.truncf %159 : vector<32x32xf32> to vector<32x32xbf16>
    %cst_75 = arith.constant dense<0.000000e+00> : vector<32x32xf32>
    %163 = tpu.matmul %0, %162, %cst_75 {dimension_numbers = #tpu.dot_dimension_numbers<[1], [0], [0], [1], [0, 0, 1, 1], [], []>} : vector<32x32xbf16>, vector<32x32xbf16>, vector<32x32xf32> -> vector<32x32xf32>
    %cst_76 = arith.constant 0.949999988 : f32
    %164 = vector.broadcast %cst_76 : f32 to vector<32x32xf32>
    %165 = arith.mulf %164, %163 : vector<32x32xf32>
    %166 = arith.addf %161, %165 : vector<32x32xf32>
    %167 = tpu.concatenate %89, %159, %166 in 1 : vector<32x32xf32>, vector<32x32xf32>, vector<32x32xf32> -> vector<32x96xf32>
    %168 = arith.truncf %167 : vector<32x96xf32> to vector<32x96xbf16>
    %c0_77 = arith.constant 0 : index
    %c0_78 = arith.constant 0 : index
    %169 = vector.load %arg4[%c0_77, %c0_78] : memref<12x96xbf16, #tpu.memory_space<vmem>>, vector<12x96xbf16>
    %cst_79 = arith.constant dense<0.000000e+00> : vector<32x96xf32>
    %170 = tpu.matmul %152, %169, %cst_79 {dimension_numbers = #tpu.dot_dimension_numbers<[1], [0], [0], [1], [0, 0, 1, 1], [], []>} : vector<32x12xbf16>, vector<12x96xbf16>, vector<32x96xf32> -> vector<32x96xf32>
    %171 = vector.extract_strided_slice %170 {offsets = [0, 0], sizes = [32, 64], strides = [1, 1]} : vector<32x96xf32> to vector<32x64xf32>
    %c0_80 = arith.constant 0 : index
    %c0_81 = arith.constant 0 : index
    %172 = vector.load %arg5[%c0_80, %c0_81] : memref<96x64xbf16, #tpu.memory_space<vmem>>, vector<96x64xbf16>
    %cst_82 = arith.constant dense<0.000000e+00> : vector<32x64xf32>
    %173 = tpu.matmul %168, %172, %cst_82 {dimension_numbers = #tpu.dot_dimension_numbers<[1], [0], [0], [1], [0, 0, 1, 1], [], []>} : vector<32x96xbf16>, vector<96x64xbf16>, vector<32x64xf32> -> vector<32x64xf32>
    %174 = arith.addf %171, %173 : vector<32x64xf32>
    %c0_83 = arith.constant 0 : index
    %c0_84 = arith.constant 0 : index
    %175 = vector.load %arg6[%c0_83, %c0_84] : memref<1x64xf32, #tpu.memory_space<vmem>>, vector<1x64xf32>
    %176 = vector.broadcast %175 : vector<1x64xf32> to vector<32x64xf32>
    %177 = arith.addf %174, %176 : vector<32x64xf32>
    %178 = vector.extract_strided_slice %177 {offsets = [0, 0], sizes = [32, 32], strides = [1, 1]} : vector<32x64xf32> to vector<32x32xf32>
    %179 = arith.negf %178 : vector<32x32xf32>
    %180 = math.exp %179 : vector<32x32xf32>
    %cst_85 = arith.constant 1.000000e+00 : f32
    %181 = vector.broadcast %cst_85 : f32 to vector<32x32xf32>
    %182 = arith.addf %181, %180 : vector<32x32xf32>
    %183 = arith.divf %181, %182 : vector<32x32xf32>
    %184 = vector.extract_strided_slice %177 {offsets = [0, 32], sizes = [32, 32], strides = [1, 1]} : vector<32x64xf32> to vector<32x32xf32>
    %185 = arith.negf %184 : vector<32x32xf32>
    %186 = math.exp %185 : vector<32x32xf32>
    %cst_86 = arith.constant 1.000000e+00 : f32
    %187 = vector.broadcast %cst_86 : f32 to vector<32x32xf32>
    %188 = arith.addf %187, %186 : vector<32x32xf32>
    %189 = arith.divf %187, %188 : vector<32x32xf32>
    %190 = arith.mulf %189, %89 : vector<32x32xf32>
    %cst_87 = arith.constant 5.000000e-02 : f32
    %191 = vector.broadcast %cst_87 : f32 to vector<32x32xf32>
    %192 = arith.mulf %191, %190 : vector<32x32xf32>
    %193 = arith.truncf %190 : vector<32x32xf32> to vector<32x32xbf16>
    %cst_88 = arith.constant dense<0.000000e+00> : vector<32x32xf32>
    %194 = tpu.matmul %0, %193, %cst_88 {dimension_numbers = #tpu.dot_dimension_numbers<[1], [0], [0], [1], [0, 0, 1, 1], [], []>} : vector<32x32xbf16>, vector<32x32xbf16>, vector<32x32xf32> -> vector<32x32xf32>
    %cst_89 = arith.constant 0.949999988 : f32
    %195 = vector.broadcast %cst_89 : f32 to vector<32x32xf32>
    %196 = arith.mulf %195, %194 : vector<32x32xf32>
    %197 = arith.addf %192, %196 : vector<32x32xf32>
    %cst_90 = arith.constant 5.000000e-02 : f32
    %198 = vector.broadcast %cst_90 : f32 to vector<32x32xf32>
    %199 = arith.mulf %198, %190 : vector<32x32xf32>
    %200 = arith.truncf %197 : vector<32x32xf32> to vector<32x32xbf16>
    %cst_91 = arith.constant dense<0.000000e+00> : vector<32x32xf32>
    %201 = tpu.matmul %0, %200, %cst_91 {dimension_numbers = #tpu.dot_dimension_numbers<[1], [0], [0], [1], [0, 0, 1, 1], [], []>} : vector<32x32xbf16>, vector<32x32xbf16>, vector<32x32xf32> -> vector<32x32xf32>
    %cst_92 = arith.constant 0.949999988 : f32
    %202 = vector.broadcast %cst_92 : f32 to vector<32x32xf32>
    %203 = arith.mulf %202, %201 : vector<32x32xf32>
    %204 = arith.addf %199, %203 : vector<32x32xf32>
    %205 = tpu.concatenate %190, %197, %204 in 1 : vector<32x32xf32>, vector<32x32xf32>, vector<32x32xf32> -> vector<32x96xf32>
    %206 = arith.truncf %205 : vector<32x96xf32> to vector<32x96xbf16>
    %207 = vector.extract_strided_slice %170 {offsets = [0, 64], sizes = [32, 32], strides = [1, 1]} : vector<32x96xf32> to vector<32x32xf32>
    %c0_93 = arith.constant 0 : index
    %c0_94 = arith.constant 0 : index
    %208 = vector.load %arg7[%c0_93, %c0_94] : memref<96x32xbf16, #tpu.memory_space<vmem>>, vector<96x32xbf16>
    %cst_95 = arith.constant dense<0.000000e+00> : vector<32x32xf32>
    %209 = tpu.matmul %206, %208, %cst_95 {dimension_numbers = #tpu.dot_dimension_numbers<[1], [0], [0], [1], [0, 0, 1, 1], [], []>} : vector<32x96xbf16>, vector<96x32xbf16>, vector<32x32xf32> -> vector<32x32xf32>
    %210 = arith.addf %207, %209 : vector<32x32xf32>
    %c0_96 = arith.constant 0 : index
    %c0_97 = arith.constant 0 : index
    %211 = vector.load %arg8[%c0_96, %c0_97] : memref<1x32xf32, #tpu.memory_space<vmem>>, vector<1x32xf32>
    %212 = vector.broadcast %211 : vector<1x32xf32> to vector<32x32xf32>
    %213 = arith.addf %210, %212 : vector<32x32xf32>
    %214 = math.tanh %213 : vector<32x32xf32>
    %215 = arith.mulf %183, %89 : vector<32x32xf32>
    %cst_98 = arith.constant 1.000000e+00 : f32
    %216 = vector.broadcast %cst_98 : f32 to vector<32x32xf32>
    %217 = arith.subf %216, %183 : vector<32x32xf32>
    %218 = arith.mulf %217, %214 : vector<32x32xf32>
    %219 = arith.addf %215, %218 : vector<32x32xf32>
    %220 = arith.truncf %219 : vector<32x32xf32> to vector<32x32xbf16>
    %c0_99 = arith.constant 0 : index
    %c0_100 = arith.constant 0 : index
    %221 = vector.load %arg9[%c0_99, %c0_100] : memref<32x128xbf16, #tpu.memory_space<vmem>>, vector<32x128xbf16>
    %cst_101 = arith.constant dense<0.000000e+00> : vector<32x128xf32>
    %222 = tpu.matmul %220, %221, %cst_101 {dimension_numbers = #tpu.dot_dimension_numbers<[1], [0], [0], [1], [0, 0, 1, 1], [], []>} : vector<32x32xbf16>, vector<32x128xbf16>, vector<32x128xf32> -> vector<32x128xf32>
    %c0_102 = arith.constant 0 : index
    %c0_103 = arith.constant 0 : index
    %223 = vector.load %arg10[%c0_102, %c0_103] : memref<1x128xf32, #tpu.memory_space<vmem>>, vector<1x128xf32>
    %224 = vector.broadcast %223 : vector<1x128xf32> to vector<32x128xf32>
    %225 = arith.addf %222, %224 : vector<32x128xf32>
    %226 = vector.shape_cast %225 : vector<32x128xf32> to vector<2x16x128xf32>
    %c0_104 = arith.constant 0 : index
    %c1_105 = arith.constant 1 : index
    %c0_106 = arith.constant 0 : index
    %c0_107 = arith.constant 0 : index
    %227 = vector.load %arg12[%c0_104, %c1_105, %c0_106, %c0_107] : memref<2x2x16x128xf32, #tpu.memory_space<vmem>>, vector<2x1x16x128xf32>
    %228 = vector.shape_cast %227 : vector<2x1x16x128xf32> to vector<2x16x128xf32>
    %229 = vector.shape_cast %226 : vector<2x16x128xf32> to vector<2x1x16x128xf32>
    tpu.vector_store %arg12[%c0_104, %c1_105, %c0_106, %c0_107], %229 {strides = array<i32>} : memref<2x2x16x128xf32, #tpu.memory_space<vmem>>, vector<2x1x16x128xf32>,
    %230 = arith.mulf %89, %219 : vector<32x32xf32>
    %cst_108 = arith.constant dense<0.000000e+00> : vector<32xf32>
    %231 = vector.multi_reduction <add>, %230, %cst_108 [1] : vector<32x32xf32> to vector<32xf32>
    %232 = vector.shape_cast %231 : vector<32xf32> to vector<32x1xf32>
    %233 = arith.mulf %89, %89 : vector<32x32xf32>
    %cst_109 = arith.constant dense<0.000000e+00> : vector<32xf32>
    %234 = vector.multi_reduction <add>, %233, %cst_109 [1] : vector<32x32xf32> to vector<32xf32>
    %235 = vector.shape_cast %234 : vector<32xf32> to vector<32x1xf32>
    %236 = arith.mulf %219, %219 : vector<32x32xf32>
    %cst_110 = arith.constant dense<0.000000e+00> : vector<32xf32>
    %237 = vector.multi_reduction <add>, %236, %cst_110 [1] : vector<32x32xf32> to vector<32xf32>
    %238 = vector.shape_cast %237 : vector<32xf32> to vector<32x1xf32>
    %239 = arith.mulf %235, %238 : vector<32x1xf32>
    %cst_111 = arith.constant 9.99999996E-13 : f32
    %240 = vector.broadcast %cst_111 : f32 to vector<32x1xf32>
    %241 = arith.addf %239, %240 : vector<32x1xf32>
    %242 = math.rsqrt %241 : vector<32x1xf32>
    %243 = arith.mulf %232, %242 : vector<32x1xf32>
    %244 = vector.extract_strided_slice %243 {offsets = [0, 0], sizes = [16, 1], strides = [1, 1]} : vector<32x1xf32> to vector<16x1xf32>
    %cst_112 = arith.constant dense<0.000000e+00> : vector<1xf32>
    %245 = vector.multi_reduction <add>, %244, %cst_112 [0] : vector<16x1xf32> to vector<1xf32>
    %246 = vector.shape_cast %245 : vector<1xf32> to vector<1x1xf32>
    %cst_113 = arith.constant 6.250000e-02 : f32
    %247 = vector.broadcast %cst_113 : f32 to vector<1x1xf32>
    %248 = arith.mulf %246, %247 : vector<1x1xf32>
    %249 = vector.shape_cast %248 : vector<1x1xf32> to vector<1x1xf32>
    %250 = vector.broadcast %249 : vector<1x1xf32> to vector<1x128xf32>
    %c0_114 = arith.constant 0 : index
    %c1_115 = arith.constant 1 : index
    %c0_116 = arith.constant 0 : index
    %c0_117 = arith.constant 0 : index
    %251 = vector.load %arg13[%c0_114, %c1_115, %c0_116, %c0_117] : memref<2x2x1x128xf32, #tpu.memory_space<vmem>>, vector<1x1x1x128xf32>
    %252 = vector.shape_cast %251 : vector<1x1x1x128xf32> to vector<1x128xf32>
    %253 = vector.shape_cast %250 : vector<1x128xf32> to vector<1x1x1x128xf32>
    tpu.vector_store %arg13[%c0_114, %c1_115, %c0_116, %c0_117], %253 {strides = array<i32>} : memref<2x2x1x128xf32, #tpu.memory_space<vmem>>, vector<1x1x1x128xf32>,
    %254 = vector.extract_strided_slice %243 {offsets = [16, 0], sizes = [16, 1], strides = [1, 1]} : vector<32x1xf32> to vector<16x1xf32>
    %cst_118 = arith.constant dense<0.000000e+00> : vector<1xf32>
    %255 = vector.multi_reduction <add>, %254, %cst_118 [0] : vector<16x1xf32> to vector<1xf32>
    %256 = vector.shape_cast %255 : vector<1xf32> to vector<1x1xf32>
    %cst_119 = arith.constant 6.250000e-02 : f32
    %257 = vector.broadcast %cst_119 : f32 to vector<1x1xf32>
    %258 = arith.mulf %256, %257 : vector<1x1xf32>
    %259 = vector.shape_cast %258 : vector<1x1xf32> to vector<1x1xf32>
    %260 = vector.broadcast %259 : vector<1x1xf32> to vector<1x128xf32>
    %c1_120 = arith.constant 1 : index
    %c1_121 = arith.constant 1 : index
    %c0_122 = arith.constant 0 : index
    %c0_123 = arith.constant 0 : index
    %261 = vector.load %arg13[%c1_120, %c1_121, %c0_122, %c0_123] : memref<2x2x1x128xf32, #tpu.memory_space<vmem>>, vector<1x1x1x128xf32>
    %262 = vector.shape_cast %261 : vector<1x1x1x128xf32> to vector<1x128xf32>
    %263 = vector.shape_cast %260 : vector<1x128xf32> to vector<1x1x1x128xf32>
    tpu.vector_store %arg13[%c1_120, %c1_121, %c0_122, %c0_123], %263 {strides = array<i32>} : memref<2x2x1x128xf32, #tpu.memory_space<vmem>>, vector<1x1x1x128xf32>,
    %264 = vector.shape_cast %219 : vector<32x32xf32> to vector<2x16x32xf32>
    %c0_124 = arith.constant 0 : index
    %c0_125 = arith.constant 0 : index
    %c0_126 = arith.constant 0 : index
    %265 = vector.load %arg11[%c0_124, %c0_125, %c0_126] : memref<2x16x32xf32, #tpu.memory_space<vmem>>, vector<2x16x32xf32>
    tpu.vector_store %arg11[%c0_124, %c0_125, %c0_126], %264 {strides = array<i32>} : memref<2x16x32xf32, #tpu.memory_space<vmem>>, vector<2x16x32xf32>,
    return
  }
  func.func @transform_0(%arg0: i32) -> (i32, i32, i32, i32) {
    %c0_i32 = arith.constant 0 : i32
    %c0_i32_0 = arith.constant 0 : i32
    %c0_i32_1 = arith.constant 0 : i32
    %c0_i32_2 = arith.constant 0 : i32
    return %arg0, %c0_i32, %c0_i32_0, %c0_i32_1 : i32, i32, i32, i32
  }
  func.func @transform_1(%arg0: i32) -> (i32, i32, i32) {
    %c0_i32 = arith.constant 0 : i32
    %c0_i32_0 = arith.constant 0 : i32
    %c0_i32_1 = arith.constant 0 : i32
    return %arg0, %c0_i32, %c0_i32_0 : i32, i32, i32
  }
  func.func @transform_2(%arg0: i32) -> (i32, i32) {
    %c0_i32 = arith.constant 0 : i32
    %c0_i32_0 = arith.constant 0 : i32
    %c0_i32_1 = arith.constant 0 : i32
    return %c0_i32, %c0_i32_0 : i32, i32
  }
  func.func @transform_3(%arg0: i32) -> (i32, i32) {
    %c0_i32 = arith.constant 0 : i32
    %c0_i32_0 = arith.constant 0 : i32
    %c0_i32_1 = arith.constant 0 : i32
    return %c0_i32, %c0_i32_0 : i32, i32
  }
  func.func @transform_4(%arg0: i32) -> (i32, i32) {
    %c0_i32 = arith.constant 0 : i32
    %c0_i32_0 = arith.constant 0 : i32
    %c0_i32_1 = arith.constant 0 : i32
    return %c0_i32, %c0_i32_0 : i32, i32
  }
  func.func @transform_5(%arg0: i32) -> (i32, i32) {
    %c0_i32 = arith.constant 0 : i32
    %c0_i32_0 = arith.constant 0 : i32
    %c0_i32_1 = arith.constant 0 : i32
    return %c0_i32, %c0_i32_0 : i32, i32
  }
  func.func @transform_6(%arg0: i32) -> (i32, i32) {
    %c0_i32 = arith.constant 0 : i32
    %c0_i32_0 = arith.constant 0 : i32
    %c0_i32_1 = arith.constant 0 : i32
    return %c0_i32, %c0_i32_0 : i32, i32
  }
  func.func @transform_7(%arg0: i32) -> (i32, i32) {
    %c0_i32 = arith.constant 0 : i32
    %c0_i32_0 = arith.constant 0 : i32
    %c0_i32_1 = arith.constant 0 : i32
    return %c0_i32, %c0_i32_0 : i32, i32
  }
  func.func @transform_8(%arg0: i32) -> (i32, i32) {
    %c0_i32 = arith.constant 0 : i32
    %c0_i32_0 = arith.constant 0 : i32
    %c0_i32_1 = arith.constant 0 : i32
    return %c0_i32, %c0_i32_0 : i32, i32
  }
  func.func @transform_9(%arg0: i32) -> (i32, i32) {
    %c0_i32 = arith.constant 0 : i32
    %c0_i32_0 = arith.constant 0 : i32
    %c0_i32_1 = arith.constant 0 : i32
    return %c0_i32, %c0_i32_0 : i32, i32
  }
  func.func @transform_10(%arg0: i32) -> (i32, i32, i32) {
    %c0_i32 = arith.constant 0 : i32
    %c0_i32_0 = arith.constant 0 : i32
    %c0_i32_1 = arith.constant 0 : i32
    return %arg0, %c0_i32, %c0_i32_0 : i32, i32, i32
  }
  func.func @transform_11(%arg0: i32) -> (i32, i32, i32, i32) {
    %c0_i32 = arith.constant 0 : i32
    %c0_i32_0 = arith.constant 0 : i32
    %c0_i32_1 = arith.constant 0 : i32
    %c0_i32_2 = arith.constant 0 : i32
    return %arg0, %c0_i32, %c0_i32_0, %c0_i32_1 : i32, i32, i32, i32
  }
  func.func @transform_12(%arg0: i32) -> (i32, i32, i32, i32) {
    %c0_i32 = arith.constant 0 : i32
    %c0_i32_0 = arith.constant 0 : i32
    %c0_i32_1 = arith.constant 0 : i32
    %c0_i32_2 = arith.constant 0 : i32
    return %arg0, %c0_i32, %c0_i32_0, %c0_i32_1 : i32, i32, i32, i32
  }
}

</mosaic_0001>

<bundles_post_ra>
// kernel: decoder_forward.1
= control target key start
LH: loop header
LB: loop body
LE: loop exit
PB: predicated region body
PF: predicated region fallthrough
CT: control target
= control target key end

     0   :  { %vm72_vm0 = vcmask 261120   ;;  %s3800_s0 = inlined_call_operand.vmem [shape: f32[2,2,16,4], index: 0, kind: input, shape index: {}]   ;;  %s3801_s1 = inlined_call_operand.vmem [shape: f32[2,16,32], index: 1, kind: input, shape index: {}]   ;;  %s3802_s2 = inlined_call_operand.vmem [shape: bf16[32,32], index: 2, kind: input, shape index: {}]   ;;  %s3803_s3 = inlined_call_operand.vmem [shape: bf16[12,96], index: 3, kind: input, shape index: {}]   ;;  %s3804_s4 = inlined_call_operand.vmem [shape: bf16[96,64], index: 4, kind: input, shape index: {}]   ;;  %s3805_s5 = inlined_call_operand.vmem [shape: f32[1,64], index: 5, kind: input, shape index: {}]   ;;  %s3806_s6 = inlined_call_operand.vmem [shape: bf16[96,32], index: 6, kind: input, shape index: {}]   ;;  %s3807_s7 = inlined_call_operand.vmem [shape: f32[1,32], index: 7, kind: input, shape index: {}]   ;;  %s3808_s8 = inlined_call_operand.vmem [shape: bf16[32,128], index: 8, kind: input, shape index: {}]   ;;  %s3809_s9 = inlined_call_operand.vmem [shape: f32[1,128], index: 9, kind: input, shape index: {}]   ;;  %s3810_s10 = inlined_call_operand.hbm [shape: f32[2,16,32], index: 10, kind: output, shape index: {0}]   ;;  %s3811_s11 = inlined_call_operand.vmem [shape: f32[2,2,16,128], index: 11, kind: output, shape index: {1}]   ;;  %s3812_s12 = inlined_call_operand.vmem [shape: f32[2,2,1,128], index: 12, kind: output, shape index: {2}]  }
   0x1   :  { %v3008_v0 = vld [vmem:[%s3800_s0] sm:$0xff]  ;;  %v3013_v1 = vld [vmem:[%s3800_s0 + $0x8] sm:$0xff]  ;;  %v3044_v9 = vld [vmem:[%s3801_s1 + $0x10] sm:$0xff] }
   0x2   :  { %v3018_v2 = vld [vmem:[%s3801_s1] sm:$0xff]  ;;  %v60_v3 = vpack.c.bf16 %v3013_v1, %v3008_v0  ;;  %v3025_v4 = vld [vmem:[%s3801_s1 + $0x8] sm:$0xff]  ;;  %v3049_v10 = vld [vmem:[%s3801_s1 + $0x18] sm:$0xff] }
   0x3   :  { %v3030_v5 = vld [vmem:[%s3800_s0 + $0x20] sm:$0xff]  ;;  %v3035_v6 = vld [vmem:[%s3800_s0 + $0x28] sm:$0xff]  ;;  %v243_v7 = vpack.c.bf16 %v3025_v4, %v3018_v2  ;;  %v244_v11 = vpack.c.bf16 %v3049_v10, %v3044_v9 }
   0x4   :  { %v61_v8 = vpack.c.bf16 %v3035_v6, %v3030_v5  ;;  %2490 = vmatprep.subr.bf16.mxu1 %v60_v3  ;;  %v3056_v12 = vld [vmem:[%s3802_s2] sm:$0xff]   ;;  %v3061_v13 = vld [vmem:[%s3802_s2 + $0x8] sm:$0xff]  }
   0x5   :  { %2506 = vmatprep.subr.bf16.mxu0 %v243_v7  ;;  %2491 = vmatpush3.bf16.msra.mxu1 %v60_v3 }
   0x6   :  { %2507 = vmatpush3.bf16.msra.mxu0 %v243_v7  ;;  %2492 = vmatprep.subr.bf16.mxu1 %v61_v8 }
   0x7   :  { %2508 = vmatprep.subr.bf16.mxu0 %v244_v11  ;;  %2494 = vmatprep.mubr.msk.bf16.mxu1 %vm72_vm0, %v3056_v12 }
   0x8   :  { %2510 = vmatprep.mubr.msk.bf16.mxu0 %vm72_vm0, %v3056_v12 }
   0x9   :  { %2493 = vmatpush3.bf16.msra.mxu1 %v61_v8 }
   0xa   :  { %2509 = vmatpush3.bf16.msra.mxu0 %v244_v11 }
   0xc   :  { %2495 = vmatmul.mubr.msk.bf16.vlgmr.msra.gmra.mrb[0].mxu1 %vm72_vm0, %v3061_v13 }
   0xd   :  { %2511 = vmatmul.mubr.msk.bf16.vlgmr.msra.gmra.mrb[0].mxu0 %vm72_vm0, %v3061_v13  ;;  %2502 = vmatprep.mubr.msk.bf16.mxu1 %vm72_vm0, %v3056_v12 }
   0xe   :  { %18 = vsyncpa [#allocation3], 0  ;;  %v3074_v14 = vmul.f32 0.05, %v3030_v5  ;;  %v3077_v15 = vmul.f32 0.05, %v3044_v9 }
   0xf   :  { %v3080_v16 = vmul.f32 0.05, %v3008_v0  ;;  %v3083_v17 = vmul.f32 0.05, %v3018_v2  ;;  %v3086_v18 = vmul.f32 0.05, %v3035_v6 }
  0x10   :  { %v3089_v20 = vmul.f32 0.05, %v3049_v10  ;;  %v3092_v21 = vmul.f32 0.05, %v3013_v1  ;;  %v3095_v25 = vmul.f32 0.05, %v3025_v4 }
  0x11   :  { %s2933_s23 = smov 4   ;;  %s2934_s24 = smov 32   ;;  %v2809_v54 = vld [vmem:[%s3804_s4] sm:$0xff]   ;;  %v2810_v55 = vld [vmem:[%s3804_s4 + $0x8] sm:$0xff]   ;;  %v2811_v56 = vld [vmem:[%s3804_s4 + $0x10] sm:$0xff]   ;;  %vm418_vm1 = vcmask 1045504  }
  0x12   :  { %v2812_v57 = vld [vmem:[%s3803_s3] sm:$0x3f]   ;;  %v2813_v62 = vld [vmem:[%s3804_s4 + $0x18] sm:$0xff]   ;;  %s2935_s19 = smov 8   ;;  %s2936_s22 = smov 64   ;;  %vm227_vm2 = vcmask 31744  }
  0x13   :  { %2678 = vmatprep.subr.msk.bf16.mxu0 %vm418_vm1, %v2812_v57  ;;  %v420_v59 = vsel %vm418_vm1, %v2812_v57, 0  ;;  %vm232_vm3 = vcmask 64512   ;;  %vm411_vm4 = vcmask 97280   ;;  %vm397_vm5 = vcmask 523264  }
  0x14   :  { %2523 = vmatpush3.bf16.msra.mxu0 %v420_v59  ;;  %vm519_vm6 = vcmask 785408  }
  0xdf   :  { %v2496_v19 = vpop.f32.mrb[0].mxu1 }
  0xe0   :  { %v130_v22 = vmul.f32 0.95, %v2496_v19  ;;  %v2512_v23 = vpop.f32.mrb[0].mxu0  ;;  %v113_v24 = vpop.f32.mrb[1].mxu1 }
  0xe1   :  { %v296_v26 = vmul.f32 0.95, %v2512_v23  ;;  %v128_v27 = vmul.f32 0.95, %v113_v24  ;;  %v279_v28 = vpop.f32.mrb[1].mxu0  ;;  %v2497_v29 = vpop.f32.mrb[2].mxu1 }
  0xe2   :  { %v294_v30 = vmul.f32 0.95, %v279_v28  ;;  %v131_v31 = vmul.f32 0.95, %v2497_v29  ;;  %v2513_v32 = vpop.f32.mrb[2].mxu0  ;;  %v116_v33 = vpop.f32.mrb[3].mxu1  ;;  %v134_v38 = vadd.f32 %v130_v22, %v3074_v14 }
  0xe3   :  { %v300_v34 = vadd.f32 %v296_v26, %v3077_v15  ;;  %v297_v35 = vmul.f32 0.95, %v2513_v32  ;;  %v129_v36 = vmul.f32 0.95, %v116_v33  ;;  %v282_v37 = vpop.f32.mrb[3].mxu0  ;;  %v132_v42 = vadd.f32 %v128_v27, %v3080_v16  ;;  %v2814_v23 = vld [vmem:[%s3804_s4 + $0x20] sm:$0xff]  }
  0xe4   :  { %v298_v39 = vadd.f32 %v294_v30, %v3083_v17  ;;  %v135_v40 = vadd.f32 %v131_v31, %v3086_v18  ;;  %v295_v41 = vmul.f32 0.95, %v282_v37 }
  0xe5   :  { %v301_v43 = vadd.f32 %v297_v35, %v3089_v20  ;;  %v133_v44 = vadd.f32 %v129_v36, %v3092_v21 }
  0xe6   :  { %v299_v45 = vadd.f32 %v295_v41, %v3095_v25  ;;  %v2687_v46 = vpack.i.bf16 %v135_v40, %v134_v38  ;;  %v137_v47 = vpack.c.bf16 %v135_v40, %v134_v38 }
  0xe7   :  { %v2692_v48 = vpack.i.bf16 %v301_v43, %v300_v34  ;;  %v136_v49 = vpack.c.bf16 %v133_v44, %v132_v42  ;;  %v2697_v50 = vpack.i.bf16 %v133_v44, %v132_v42  ;;  %v303_v51 = vpack.c.bf16 %v301_v43, %v300_v34 }
  0xe8   :  { %2688 = vrot.lane.b32.xlu1 %v2687_v46, %s2933_s23  ;;  %v302_v52 = vpack.c.bf16 %v299_v45, %v298_v39  ;;  %v2702_v53 = vpack.i.bf16 %v299_v45, %v298_v39 }
  0xe9   :  { %2693 = vrot.lane.b32.xlu0 %v2692_v48, %s2934_s24  ;;  %2498 = vmatprep.subr.bf16.mxu1 %v136_v49 }
  0xea   :  { %2499 = vmatpush3.bf16.msra.mxu1 %v136_v49 }
  0xeb   :  { %2500 = vmatprep.subr.bf16.mxu1 %v137_v47 }
  0xed   :  { %2698 = vrot.lane.b32.xlu0 %v2697_v50, %s2933_s23 }
  0xee   :  { %2501 = vmatpush3.bf16.msra.mxu1 %v137_v47 }
  0xef   :  { %2514 = vmatprep.subr.bf16.mxu1 %v302_v52 }
  0xf1   :  { %2703 = vrot.lane.b32.xlu0 %v2702_v53, %s2934_s24  ;;  %2503 = vmatmul.mubr.msk.bf16.vlgmr.msra.gmra.mrb[4].mxu1 %vm72_vm0, %v3061_v13 }
  0xf2   :  { %2515 = vmatpush3.bf16.msra.mxu1 %v302_v52  ;;  %2518 = vmatprep.mubr.msk.bf16.mxu1 %vm72_vm0, %v3056_v12 }
  0xf3   :  { %2516 = vmatprep.subr.bf16.mxu1 %v303_v51 }
  0xf6   :  { %2517 = vmatpush3.bf16.msra.mxu1 %v303_v51 }
  0xf7   :  { %2528 = vmatprep.subr.bf16.mxu1 %v2809_v54 }
  0xf9   :  { %2519 = vmatmul.mubr.msk.bf16.vlgmr.msra.gmra.mrb[8].mxu1 %vm72_vm0, %v3061_v13 }
  0xfa   :  { %2529 = vmatpush3.bf16.msra.mxu1 %v2809_v54 }
  0xfb   :  { %2530 = vmatprep.subr.bf16.mxu1 %v2810_v55 }
  0xfe   :  { %2531 = vmatpush3.bf16.msra.mxu1 %v2810_v55 }
  0xff   :  { %2532 = vmatprep.subr.bf16.mxu1 %v2811_v56 }
 0x102   :  { %2533 = vmatpush3.bf16.msra.mxu1 %v2811_v56 }
 0x103   :  { %2534 = vmatprep.subr.bf16.mxu1 %v2813_v62 }
 0x106   :  { %2535 = vmatpush3.bf16.msra.mxu1 %v2813_v62 }
 0x107   :  { %2536 = vmatprep.subr.bf16.mxu1 %v2814_v23 }
 0x10a   :  { %2537 = vmatpush3.bf16.msra.mxu1 %v2814_v23 }
 0x1c4   :  { %v2504_v58 = vpop.f32.mrb[4].mxu1 }
 0x1c5   :  { %v189_v60 = vmul.f32 0.95, %v2504_v58  ;;  %v172_v61 = vpop.f32.mrb[5].mxu1 }
 0x1c6   :  { %v187_v63 = vmul.f32 0.95, %v172_v61  ;;  %v2505_v3 = vpop.f32.mrb[6].mxu1 }
 0x1c7   :  { %v190_v7 = vmul.f32 0.95, %v2505_v3  ;;  %v175_v8 = vpop.f32.mrb[7].mxu1  ;;  %v193_v19 = vadd.f32 %v189_v60, %v3074_v14 }
 0x1c8   :  { %v188_v11 = vmul.f32 0.95, %v175_v8  ;;  %v191_v24 = vadd.f32 %v187_v63, %v3080_v16 }
 0x1c9   :  { %v194_v22 = vadd.f32 %v190_v7, %v3086_v18  ;;  %v2815_v18 = vld [vmem:[%s3804_s4 + $0x28] sm:$0xff]  }
 0x1ca   :  { %v192_v26 = vadd.f32 %v188_v11, %v3092_v21  ;;  %2538 = vmatprep.subr.bf16.mxu1 %v2815_v18 }
 0x1cb   :  { %v2707_v27 = vpack.i.bf16 %v194_v22, %v193_v19  ;;  %2539 = vmatpush3.bf16.msra.mxu1 %v2815_v18 }
 0x1cc   :  { %v2520_v28 = vpop.f32.mrb[8].mxu1  ;;  %v2712_v29 = vpack.i.bf16 %v192_v26, %v191_v24 }
 0x1cd   :  { %v355_v30 = vmul.f32 0.95, %v2520_v28  ;;  %2708 = vrot.lane.b32.xlu0 %v2707_v27, %s2935_s19  ;;  %v338_v14 = vpop.f32.mrb[9].mxu1 }
 0x1ce   :  { %v353_v31 = vmul.f32 0.95, %v338_v14  ;;  %v2521_v32 = vpop.f32.mrb[10].mxu1  ;;  %2713 = vrot.lane.b32.xlu1 %v2712_v29, %s2935_s19 }
 0x1cf   :  { %v356_v16 = vmul.f32 0.95, %v2521_v32  ;;  %v341_v21 = vpop.f32.mrb[11].mxu1  ;;  %v359_v34 = vadd.f32 %v355_v30, %v3077_v15  ;;  %v2694_v15 = vpop.permute.xlu0 %2693 }
 0x1d0   :  { %v354_v33 = vmul.f32 0.95, %v341_v21  ;;  %v357_v36 = vadd.f32 %v353_v31, %v3083_v17  ;;  %v2696_v61 = vunpack.i.h.bf16 %v2694_v15  ;;  %v2695_v62 = vunpack.i.l.bf16 %v2694_v15 }
 0x1d1   :  { %v360_v35 = vadd.f32 %v356_v16, %v3089_v20  ;;  %618 = vrot.lane.b32.xlu0 %v3018_v2, %s2934_s24  ;;  %v2689_v20 = vpop.permute.xlu1 %2688  ;;  %v3199_v16 = vld [vmem:[%s3805_s5] ss:$0 sm:$0xff]  ;;  %s2937_s5 = smov 96  }
 0x1d2   :  { %v358_v37 = vadd.f32 %v354_v33, %v3095_v25  ;;  %v2691_v40 = vunpack.i.h.bf16 %v2689_v20  ;;  %v2690_v41 = vunpack.i.l.bf16 %v2689_v20  ;;  %v396_v24 = vsel %vm72_vm0, %v3049_v10, %v2696_v61 }
 0x1d3   :  { %v2722_v38 = vpack.i.bf16 %v360_v35, %v359_v34  ;;  %v2699_v17 = vpop.permute.xlu0 %2698  ;;  %v395_v26 = vsel %vm72_vm0, %v3044_v9, %v2695_v62 }
 0x1d4   :  { %v2717_v39 = vpack.i.bf16 %v358_v37, %v357_v36  ;;  %v2701_v42 = vunpack.i.h.bf16 %v2699_v17  ;;  %v2700_v43 = vunpack.i.l.bf16 %v2699_v17  ;;  %v231_v48 = vsel %vm227_vm2, %v3035_v6, %v2691_v40 }
 0x1d5   :  { %622 = vrot.lane.b32.xlu0 %v3044_v9, %s2934_s24  ;;  %v230_v49 = vsel %vm227_vm2, %v3030_v5, %v2690_v41 }
 0x1d6   :  { %2718 = vrot.lane.b32.xlu1 %v2717_v39, %s2936_s22  ;;  %v229_v52 = vsel %vm227_vm2, %v3013_v1, %v2701_v42  ;;  %v228_v53 = vsel %vm227_vm2, %v3008_v0, %v2700_v43 }
 0x1d7   :  { %v2704_v25 = vpop.permute.xlu0 %2703 }
 0x1d8   :  { %v2706_v5 = vunpack.i.h.bf16 %v2704_v25  ;;  %v2705_v59 = vunpack.i.l.bf16 %v2704_v25 }
 0x1da   :  { %2723 = vrot.lane.b32.xlu1 %v2722_v38, %s2936_s22  ;;  %v394_v63 = vsel %vm72_vm0, %v3025_v4, %v2706_v5  ;;  %v393_v3 = vsel %vm72_vm0, %v3018_v2, %v2705_v59 }
 0x1de   :  { %620 = vrot.lane.b32.xlu1 %v3025_v4, %s2934_s24 }
 0x1e2   :  { %624 = vrot.lane.b32.xlu1 %v3049_v10, %s2934_s24 }
 0x23f   :  { %v2709_v44 = vpop.permute.xlu0 %2708 }
 0x240   :  { %v2711_v45 = vunpack.i.h.bf16 %v2709_v44  ;;  %v2710_v46 = vunpack.i.l.bf16 %v2709_v44  ;;  %v2714_v47 = vpop.permute.xlu1 %2713 }
 0x241   :  { %v2716_v50 = vunpack.i.h.bf16 %v2714_v47  ;;  %v2715_v51 = vunpack.i.l.bf16 %v2714_v47 }
 0x242   :  { %v236_v54 = vsel %vm232_vm3, %v231_v48, %v2711_v45  ;;  %v235_v55 = vsel %vm232_vm3, %v230_v49, %v2710_v46 }
 0x243   :  { %v234_v56 = vsel %vm232_vm3, %v229_v52, %v2716_v50  ;;  %v233_v57 = vsel %vm232_vm3, %v228_v53, %v2715_v51  ;;  %v238_v58 = vpack.c.bf16 %v236_v54, %v235_v55  ;;  %v619_v51 = vpop.permute.xlu0 %618 }
 0x244   :  { %v237_v6 = vpack.c.bf16 %v234_v56, %v233_v57 }
 0x246   :  { %2524 = vmatprep.mubr.msk.bf16.mxu0 %vm411_vm4, %v237_v6 }
 0x247   :  { %2525 = vmatmul.mubr.msk.bf16.vlgmr.msra.gmra.mrb[4].mxu0 %vm411_vm4, %v238_v58  ;;  %v623_v54 = vpop.permute.xlu0 %622 }
 0x248   :  { %v2719_v1 = vpop.permute.xlu1 %2718  ;;  %2548 = vmatprep.mubr.msk.bf16.mxu0 %vm72_vm0, %v3056_v12 }
 0x249   :  { %v2721_v0 = vunpack.i.h.bf16 %v2719_v1  ;;  %v2720_v60 = vunpack.i.l.bf16 %v2719_v1 }
 0x24b   :  { %v399_v7 = vsel %vm397_vm5, %v394_v63, %v2721_v0  ;;  %v398_v8 = vsel %vm397_vm5, %v393_v3, %v2720_v60 }
 0x24c   :  { %v402_v11 = vpack.c.bf16 %v399_v7, %v398_v8  ;;  %v2724_v19 = vpop.permute.xlu1 %2723 }
 0x24d   :  { %v2726_v22 = vunpack.i.h.bf16 %v2724_v19  ;;  %v2725_v23 = vunpack.i.l.bf16 %v2724_v19 }
 0x24e   :  { %2540 = vmatprep.mubr.msk.bf16.mxu1 %vm519_vm6, %v402_v11 }
 0x24f   :  { %v401_v27 = vsel %vm397_vm5, %v396_v24, %v2726_v22  ;;  %v400_v28 = vsel %vm397_vm5, %v395_v26, %v2725_v23 }
 0x250   :  { %v403_v29 = vpack.c.bf16 %v401_v27, %v400_v28  ;;  %v621_v52 = vpop.permute.xlu1 %620 }
 0x252   :  { %2541 = vmatmul.mubr.msk.bf16.vlgmr.msra.gmra.mrb[12].mxu1 %vm519_vm6, %v403_v29 }
 0x254   :  { %v625_v55 = vpop.permute.xlu1 %624 }
 0x31a   :  { %v3188_v30 = vpop.f32.mrb[4].mxu0 }
 0x31b   :  { %v3190_v14 = vpop.f32.mrb[5].mxu0 }
 0x31c   :  { %v3192_v18 = vpop.f32.mrb[6].mxu0 }
 0x31d   :  { %v3194_v31 = vpop.f32.mrb[7].mxu0 }
 0x325   :  { %v2542_v32 = vpop.f32.mrb[12].mxu1 }
 0x326   :  { %v577_v21 = vadd.f32 %v2542_v32, %v3188_v30  ;;  %v560_v33 = vpop.f32.mrb[13].mxu1 }
 0x327   :  { %v575_v34 = vadd.f32 %v560_v33, %v3190_v14  ;;  %v2543_v35 = vpop.f32.mrb[14].mxu1 }
 0x328   :  { %v588_v36 = vadd.f32 %v3199_v16, %v577_v21  ;;  %v578_v37 = vadd.f32 %v2543_v35, %v3192_v18  ;;  %v563_v38 = vpop.f32.mrb[15].mxu1 }
 0x329   :  { %v586_v39 = vadd.f32 %v3199_v16, %v575_v34  ;;  %v576_v15 = vadd.f32 %v563_v38, %v3194_v31 }
 0x32a   :  { %v2327_v17 = vmul.f32 -1.442695, %v588_v36  ;;  %v589_v20 = vadd.f32 %v3199_v16, %v578_v37 }
 0x32b   :  { %v2325_v25 = vmul.f32 -1.442695, %v586_v39  ;;  %v587_v40 = vadd.f32 %v3199_v16, %v576_v15 }
 0x32c   :  { %2839 = vpow2.f32 %v2327_v17  ;;  %v2328_v41 = vmul.f32 -1.442695, %v589_v20 }
 0x32d   :  { %2841 = vpow2.f32 %v2325_v25  ;;  %v2326_v42 = vmul.f32 -1.442695, %v587_v40 }
 0x32e   :  { %2843 = vpow2.f32 %v2328_v41 }
 0x32f   :  { %2845 = vpow2.f32 %v2326_v42 }
 0x336   :  { %v2840_v43 = vpop.eup %2839 }
 0x337   :  { %v2842_v44 = vpop.eup %2841  ;;  %v604_v45 = vadd.f32 1.0, %v2840_v43 }
 0x338   :  { %v2844_v46 = vpop.eup %2843  ;;  %v602_v47 = vadd.f32 1.0, %v2842_v44 }
 0x339   :  { %v2846_v48 = vpop.eup %2845  ;;  %2847 = vrcp.f32 %v604_v45  ;;  %v605_v49 = vadd.f32 1.0, %v2844_v46  ;;  %v2816_v45 = vld [vmem:[%s3806_s6] sm:$0xff]   ;;  %v2817_v46 = vld [vmem:[%s3806_s6 + $0x8] sm:$0xff]  }
 0x33a   :  { %2849 = vrcp.f32 %v602_v47  ;;  %v603_v50 = vadd.f32 1.0, %v2846_v48 }
 0x33b   :  { %2851 = vrcp.f32 %v605_v49  ;;  %v2818_v49 = vld [vmem:[%s3806_s6 + $0x10] sm:$0xff]  }
 0x33c   :  { %2853 = vrcp.f32 %v603_v50 }
 0x343   :  { %v3209_v53 = vpop.eup %2847 }
 0x344   :  { %v3211_v56 = vpop.eup %2849  ;;  %v3218_v58 = vmul.f32 %v3209_v53, %v623_v54  ;;  %v2821_v54 = vld [vmem:[%s3806_s6 + $0x28] sm:$0xff]  }
 0x345   :  { %v3213_v57 = vpop.eup %2851  ;;  %v3224_v59 = vmul.f32 %v3211_v56, %v619_v51  ;;  %v2819_v51 = vld [vmem:[%s3806_s6 + $0x18] sm:$0xff]  }
 0x346   :  { %v3215_v6 = vpop.eup %2853  ;;  %v3221_v5 = vmul.f32 %v3213_v57, %v625_v55  ;;  %v636_v36 = vmul.f32 0.05, %v3218_v58 }
 0x347   :  { %v3227_v1 = vmul.f32 %v3215_v6, %v621_v52  ;;  %v634_v28 = vmul.f32 0.05, %v3224_v59  ;;  %v2820_v52 = vld [vmem:[%s3806_s6 + $0x20] sm:$0xff]  }
 0x348   :  { %v639_v0 = vpack.c.bf16 %v3221_v5, %v3218_v58  ;;  %v2732_v60 = vpack.i.bf16 %v3221_v5, %v3218_v58  ;;  %v637_v37 = vmul.f32 0.05, %v3221_v5 }
 0x349   :  { %v638_v61 = vpack.c.bf16 %v3227_v1, %v3224_v59  ;;  %v2727_v62 = vpack.i.bf16 %v3227_v1, %v3224_v59  ;;  %v635_v29 = vmul.f32 0.05, %v3227_v1 }
 0x34a   :  { %644 = vrot.lane.b32.xlu1 %v639_v0, %s2937_s5 }
 0x34b   :  { %642 = vrot.lane.b32.xlu0 %v638_v61, %s2937_s5 }
 0x3bc   :  { %v645_v3 = vpop.permute.xlu1 %644 }
 0x3bd   :  { %v643_v63 = vpop.permute.xlu0 %642 }
 0x3be   :  { %2544 = vmatprep.subr.bf16.mxu0 %v643_v63 }
 0x3bf   :  { %2545 = vmatpush3.bf16.msra.mxu0 %v643_v63 }
 0x3c0   :  { %2546 = vmatprep.subr.bf16.mxu0 %v645_v3 }
 0x3c3   :  { %2547 = vmatpush3.bf16.msra.mxu0 %v645_v3 }
 0x3c6   :  { %2549 = vmatmul.mubr.msk.bf16.vlgmr.msra.gmra.mrb[8].mxu0 %vm72_vm0, %v3061_v13 }
 0x3c7   :  { %2556 = vmatprep.mubr.msk.bf16.mxu0 %vm72_vm0, %v3056_v12 }
 0x499   :  { %v2550_v7 = vpop.f32.mrb[8].mxu0 }
 0x49a   :  { %v682_v8 = vpop.f32.mrb[9].mxu0  ;;  %v699_v24 = vmul.f32 0.95, %v2550_v7 }
 0x49b   :  { %v697_v11 = vmul.f32 0.95, %v682_v8  ;;  %v2551_v19 = vpop.f32.mrb[10].mxu0 }
 0x49c   :  { %v685_v22 = vpop.f32.mrb[11].mxu0  ;;  %v700_v26 = vmul.f32 0.95, %v2551_v19 }
 0x49d   :  { %v698_v23 = vmul.f32 0.95, %v685_v22  ;;  %705 = vrot.lane.b32.xlu0 %v697_v11, %s2934_s24 }
 0x49f   :  { %707 = vrot.lane.b32.xlu1 %v698_v23, %s2934_s24 }
 0x4a1   :  { %709 = vrot.lane.b32.xlu0 %v699_v24, %s2934_s24 }
 0x4a3   :  { %711 = vrot.lane.b32.xlu1 %v700_v26, %s2934_s24 }
 0x50f   :  { %v706_v27 = vpop.permute.xlu0 %705 }
 0x510   :  { %v3249_v21 = vadd.f32 %v706_v27, %v634_v28 }
 0x511   :  { %v708_v32 = vpop.permute.xlu1 %707 }
 0x512   :  { %v3251_v33 = vadd.f32 %v708_v32, %v635_v29 }
 0x513   :  { %v710_v34 = vpop.permute.xlu0 %709 }
 0x514   :  { %v721_v35 = vpack.c.bf16 %v3251_v33, %v3249_v21  ;;  %v3257_v39 = vadd.f32 %v710_v34, %v636_v36 }
 0x515   :  { %v712_v38 = vpop.permute.xlu1 %711 }
 0x516   :  { %v3259_v15 = vadd.f32 %v712_v38, %v637_v37  ;;  %725 = vrot.lane.b32.xlu0 %v721_v35, %s2937_s5 }
 0x518   :  { %v722_v17 = vpack.c.bf16 %v3259_v15, %v3257_v39 }
 0x51a   :  { %727 = vrot.lane.b32.xlu1 %v722_v17, %s2937_s5 }
 0x588   :  { %v726_v20 = vpop.permute.xlu0 %725 }
 0x589   :  { %2552 = vmatprep.subr.bf16.mxu0 %v726_v20 }
 0x58a   :  { %2553 = vmatpush3.bf16.msra.mxu0 %v726_v20 }
 0x58c   :  { %v728_v25 = vpop.permute.xlu1 %727 }
 0x58d   :  { %2554 = vmatprep.subr.bf16.mxu0 %v728_v25 }
 0x58e   :  { %2555 = vmatpush3.bf16.msra.mxu0 %v728_v25 }
 0x58f   :  { %2560 = vmatprep.subr.bf16.mxu0 %v2816_v45 }
 0x591   :  { %2557 = vmatmul.mubr.msk.bf16.vlgmr.msra.gmra.mrb[12].mxu0 %vm72_vm0, %v3061_v13 }
 0x592   :  { %2561 = vmatpush3.bf16.msra.mxu0 %v2816_v45 }
 0x593   :  { %2562 = vmatprep.subr.bf16.mxu0 %v2817_v46 }
 0x596   :  { %2563 = vmatpush3.bf16.msra.mxu0 %v2817_v46 }
 0x597   :  { %2564 = vmatprep.subr.bf16.mxu0 %v2818_v49 }
 0x59a   :  { %2565 = vmatpush3.bf16.msra.mxu0 %v2818_v49 }
 0x59b   :  { %2566 = vmatprep.subr.bf16.mxu0 %v2819_v51 }
 0x59e   :  { %2567 = vmatpush3.bf16.msra.mxu0 %v2819_v51 }
 0x59f   :  { %2568 = vmatprep.subr.bf16.mxu0 %v2820_v52 }
 0x5a2   :  { %2569 = vmatpush3.bf16.msra.mxu0 %v2820_v52 }
 0x5a3   :  { %2570 = vmatprep.subr.bf16.mxu0 %v2821_v54 }
 0x5a6   :  { %2571 = vmatpush3.bf16.msra.mxu0 %v2821_v54 }
 0x664   :  { %v2558_v40 = vpop.f32.mrb[12].mxu0 }
 0x665   :  { %v765_v41 = vpop.f32.mrb[13].mxu0  ;;  %v782_v48 = vmul.f32 0.95, %v2558_v40 }
 0x666   :  { %v780_v42 = vmul.f32 0.95, %v765_v41  ;;  %v2559_v43 = vpop.f32.mrb[14].mxu0 }
 0x667   :  { %v768_v44 = vpop.f32.mrb[15].mxu0  ;;  %v783_v50 = vmul.f32 0.95, %v2559_v43 }
 0x668   :  { %v781_v47 = vmul.f32 0.95, %v768_v44  ;;  %788 = vrot.lane.b32.xlu0 %v780_v42, %s2934_s24 }
 0x66a   :  { %790 = vrot.lane.b32.xlu1 %v781_v47, %s2934_s24 }
 0x66c   :  { %792 = vrot.lane.b32.xlu0 %v782_v48, %s2934_s24 }
 0x66e   :  { %794 = vrot.lane.b32.xlu1 %v783_v50, %s2934_s24 }
 0x670   :  { %2728 = vrot.lane.b32.xlu0 %v2727_v62, %s2937_s5 }
 0x672   :  { %2733 = vrot.lane.b32.xlu1 %v2732_v60, %s2937_s5 }
 0x6da   :  { %v789_v55 = vpop.permute.xlu0 %788 }
 0x6db   :  { %v800_v1 = vadd.f32 %v789_v55, %v634_v28  ;;  %v2822_v55 = vld [vmem:[%s3808_s8] sm:$0xff]  }
 0x6dc   :  { %v791_v59 = vpop.permute.xlu1 %790  ;;  %2576 = vmatprep.subr.bf16.mxu1 %v2822_v55 }
 0x6dd   :  { %v801_v58 = vadd.f32 %v791_v59, %v635_v29  ;;  %2577 = vmatpush3.bf16.msra.mxu1 %v2822_v55 }
 0x6de   :  { %v793_v5 = vpop.permute.xlu0 %792 }
 0x6df   :  { %v2737_v0 = vpack.i.bf16 %v801_v58, %v800_v1  ;;  %v802_v61 = vadd.f32 %v793_v5, %v636_v36 }
 0x6e0   :  { %v795_v60 = vpop.permute.xlu1 %794 }
 0x6e1   :  { %v803_v62 = vadd.f32 %v795_v60, %v637_v37  ;;  %2738 = vrot.lane.b32.xlu0 %v2737_v0, %s2934_s24  ;;  %v990_v60 = vsub.f32 1.0, %v3211_v56 }
 0x6e2   :  { %v2729_v3 = vpop.permute.xlu0 %2728 }
 0x6e3   :  { %v2742_v63 = vpack.i.bf16 %v803_v62, %v802_v61  ;;  %v2731_v7 = vunpack.i.h.bf16 %v2729_v3  ;;  %v2730_v8 = vunpack.i.l.bf16 %v2729_v3  ;;  %v991_v61 = vsub.f32 1.0, %v3215_v6 }
 0x6e4   :  { %v2734_v11 = vpop.permute.xlu1 %2733  ;;  %v986_v3 = vmul.f32 %v3211_v56, %v3018_v2  ;;  %v989_v2 = vmul.f32 %v3213_v57, %v3049_v10 }
 0x6e5   :  { %2743 = vrot.lane.b32.xlu1 %v2742_v63, %s2934_s24  ;;  %v837_v24 = vsel %vm72_vm0, %v2731_v7, %v3251_v33  ;;  %v836_v26 = vsel %vm72_vm0, %v2730_v8, %v3249_v21  ;;  %v2736_v27 = vunpack.i.h.bf16 %v2734_v11  ;;  %v2735_v28 = vunpack.i.l.bf16 %v2734_v11 }
 0x6e6   :  { %v987_v8 = vmul.f32 %v3215_v6, %v3025_v4 }
 0x6e7   :  { %v839_v38 = vsel %vm72_vm0, %v2736_v27, %v3259_v15  ;;  %v838_v17 = vsel %vm72_vm0, %v2735_v28, %v3257_v39  ;;  %v3321_v39 = vld [vmem:[%s3807_s7] ss:$0 sm:$0xff]  ;;  %v988_v28 = vmul.f32 %v3209_v53, %v3044_v9 }
 0x753   :  { %v2739_v19 = vpop.permute.xlu0 %2738 }
 0x754   :  { %v2741_v22 = vunpack.i.h.bf16 %v2739_v19  ;;  %v2740_v23 = vunpack.i.l.bf16 %v2739_v19 }
 0x756   :  { %v841_v29 = vsel %vm397_vm5, %v837_v24, %v2741_v22  ;;  %v840_v32 = vsel %vm397_vm5, %v836_v26, %v2740_v23  ;;  %v992_v22 = vsub.f32 1.0, %v3209_v53  ;;  %v993_v24 = vsub.f32 1.0, %v3213_v57  ;;  %v2342_v57 = vld [vmem:[%s3809_s9] ss:$0 sm:$0xff] }
 0x757   :  { %v844_v34 = vpack.c.bf16 %v841_v29, %v840_v32  ;;  %v2744_v35 = vpop.permute.xlu1 %2743  ;;  %v3375_v32 = vld [vmem:[%s3800_s0 + $0x30] sm:$0xff] }
 0x758   :  { %v2746_v36 = vunpack.i.h.bf16 %v2744_v35  ;;  %v2745_v37 = vunpack.i.l.bf16 %v2744_v35 }
 0x759   :  { %2572 = vmatprep.mubr.msk.bf16.mxu0 %vm519_vm6, %v844_v34  ;;  %v3380_v34 = vld [vmem:[%s3800_s0 + $0x38] sm:$0xff] }
 0x75a   :  { %v842_v21 = vsel %vm397_vm5, %v838_v17, %v2745_v37  ;;  %v843_v33 = vsel %vm397_vm5, %v839_v38, %v2746_v36  ;;  %v1190_v53 = vpack.c.bf16 %v3380_v34, %v3375_v32 }
 0x75b   :  { %v845_v20 = vpack.c.bf16 %v843_v33, %v842_v21 }
 0x75d   :  { %2573 = vmatmul.mubr.msk.bf16.vlgmr.msra.gmra.mrb[16].mxu0 %vm519_vm6, %v845_v20 }
 0x75e   :  { %2604 = vmatprep.mubr.msk.bf16.mxu0 %vm72_vm0, %v3056_v12 }
 0x830   :  { %v2574_v25 = vpop.f32.mrb[16].mxu0 }
 0x831   :  { %957 = vrot.lane.b32.xlu0 %v2574_v25, %s2936_s22  ;;  %v934_v40 = vpop.f32.mrb[17].mxu0 }
 0x832   :  { %v2575_v15 = vpop.f32.mrb[18].mxu0 }
 0x833   :  { %v937_v41 = vpop.f32.mrb[19].mxu0 }
 0x834   :  { %955 = vrot.lane.b32.xlu1 %v937_v41, %s2936_s22 }
 0x835   :  { %953 = vrot.lane.b32.xlu0 %v934_v40, %s2936_s22 }
 0x838   :  { %959 = vrot.lane.b32.xlu1 %v2575_v15, %s2936_s22 }
 0x839   :  { %975 = vrot.lane.b32.xlu0 %v3321_v39, %s2936_s22 }
 0x8a3   :  { %v958_v42 = vpop.permute.xlu0 %957 }
 0x8a4   :  { %v967_v50 = vadd.f32 %v3188_v30, %v958_v42  ;;  %v3339_v30 = vld [vmem:[%s3800_s0 + $0x10] sm:$0xff] }
 0x8a6   :  { %v956_v43 = vpop.permute.xlu1 %955 }
 0x8a7   :  { %v954_v44 = vpop.permute.xlu0 %953  ;;  %v966_v45 = vadd.f32 %v956_v43, %v3194_v31 }
 0x8a8   :  { %v965_v46 = vadd.f32 %v954_v44, %v3190_v14  ;;  %v2823_v14 = vld [vmem:[%s3808_s8 + $0x8] sm:$0xff]  }
 0x8a9   :  { %2578 = vmatprep.subr.bf16.mxu1 %v2823_v14 }
 0x8aa   :  { %v960_v47 = vpop.permute.xlu1 %959  ;;  %2579 = vmatpush3.bf16.msra.mxu1 %v2823_v14 }
 0x8ab   :  { %v968_v48 = vadd.f32 %v3192_v18, %v960_v47  ;;  %v976_v49 = vpop.permute.xlu0 %975  ;;  %v3344_v18 = vld [vmem:[%s3800_s0 + $0x18] sm:$0xff]  ;;  %v3426_v47 = vmul.f32 0.05, %v3375_v32 }
 0x8ac   :  { %v978_v51 = vadd.f32 %v976_v49, %v965_v46  ;;  %v979_v52 = vadd.f32 %v976_v49, %v966_v45  ;;  %v980_v54 = vadd.f32 %v976_v49, %v967_v50  ;;  %v1189_v31 = vpack.c.bf16 %v3344_v18, %v3339_v30 }
 0x8ad   :  { %v981_v59 = vadd.f32 %v976_v49, %v968_v48  ;;  %v3429_v50 = vmul.f32 0.05, %v3339_v30 }
 0x8ae   :  { %2855 = vtanh.f32 %v978_v51  ;;  %2584 = vmatprep.subr.bf16.mxu1 %v1189_v31 }
 0x8af   :  { %2857 = vtanh.f32 %v979_v52 }
 0x8b0   :  { %2859 = vtanh.f32 %v980_v54 }
 0x8b1   :  { %2861 = vtanh.f32 %v981_v59  ;;  %v3434_v59 = vmul.f32 0.05, %v3380_v34 }
 0x8b8   :  { %v2856_v1 = vpop.eup %2855 }
 0x8b9   :  { %v2858_v58 = vpop.eup %2857  ;;  %998 = vrot.lane.b32.xlu1 %v2856_v1, %s2936_s22 }
 0x8ba   :  { %1000 = vrot.lane.b32.xlu0 %v2858_v58, %s2936_s22  ;;  %v2860_v5 = vpop.eup %2859 }
 0x8bb   :  { %v2862_v0 = vpop.eup %2861 }
 0x8bd   :  { %1002 = vrot.lane.b32.xlu1 %v2860_v5, %s2936_s22  ;;  %v1186_v5 = vmul.f32 0.05, %v3344_v18 }
 0x8be   :  { %1004 = vrot.lane.b32.xlu0 %v2862_v0, %s2936_s22 }
 0x92b   :  { %v999_v62 = vpop.permute.xlu1 %998 }
 0x92c   :  { %v1001_v63 = vpop.permute.xlu0 %1000  ;;  %v1010_v7 = vmul.f32 %v999_v62, %v990_v60 }
 0x92d   :  { %v1011_v11 = vmul.f32 %v1001_v63, %v991_v61 }
 0x92e   :  { %v3358_v19 = vadd.f32 %v1010_v7, %v986_v3 }
 0x92f   :  { %v3361_v23 = vadd.f32 %v1011_v11, %v987_v8  ;;  %v1003_v26 = vpop.permute.xlu1 %1002 }
 0x930   :  { %v1005_v27 = vpop.permute.xlu0 %1004  ;;  %v1012_v29 = vmul.f32 %v1003_v26, %v992_v22  ;;  %v3408_v20 = vmul.f32 0.05, %v3358_v19 }
 0x931   :  { %v1013_v56 = vmul.f32 %v1005_v27, %v993_v24  ;;  %v1018_v4 = vpack.c.bf16 %v3361_v23, %v3358_v19  ;;  %v3411_v25 = vmul.f32 0.05, %v3361_v23 }
 0x932   :  { %v3370_v6 = vadd.f32 %v1012_v29, %v988_v28 }
 0x933   :  { %v3382_v9 = vadd.f32 %v1013_v56, %v989_v2  ;;  %2580 = vmatprep.mubr.msk.bf16.mxu1 %vm72_vm0, %v1018_v4  ;;  %2600 = vmatprep.subr.bf16.mxu0 %v1018_v4  ;;  %v3449_v2 = vld [vmem:[%s3802_s2 + $0x8] sm:$0xff]   ;;  %v3456_v56 = vld [vmem:[%s3802_s2] sm:$0xff]  }
 0x934   :  { %2601 = vmatpush3.bf16.msra.mxu0 %v1018_v4  ;;  %v3417_v40 = vmul.f32 0.05, %v3370_v6  ;;  %v2824_v4 = vld [vmem:[%s3804_s4] sm:$0xff]  }
 0x935   :  { %v1019_v10 = vpack.c.bf16 %v3382_v9, %v3370_v6  ;;  %v3423_v43 = vmul.f32 0.05, %v3382_v9 }
 0x937   :  { %2581 = vmatmul.mubr.msk.bf16.vlgmr.msra.gmra.mrb[16].mxu1 %vm72_vm0, %v1019_v10  ;;  %2602 = vmatprep.subr.bf16.mxu0 %v1019_v10 }
 0x938   :  { %2585 = vmatpush3.bf16.msra.mxu1 %v1189_v31  ;;  %2603 = vmatpush3.bf16.msra.mxu0 %v1019_v10  ;;  %v2825_v10 = vld [vmem:[%s3804_s4 + $0x8] sm:$0xff]  }
 0x939   :  { %2586 = vmatprep.subr.bf16.mxu1 %v1190_v53  ;;  %2588 = vmatprep.mubr.msk.bf16.mxu1 %vm72_vm0, %v3056_v12 }
 0x93b   :  { %2605 = vmatmul.mubr.msk.bf16.vlgmr.msra.gmra.mrb[20].mxu0 %vm72_vm0, %v3061_v13 }
 0x93c   :  { %2587 = vmatpush3.bf16.msra.mxu1 %v1190_v53  ;;  %v2826_v53 = vld [vmem:[%s3804_s4 + $0x10] sm:$0xff]  }
 0x93f   :  { %2589 = vmatmul.mubr.msk.bf16.vlgmr.msra.gmra.mrb[20].mxu1 %vm72_vm0, %v3061_v13 }
 0x940   :  { %2596 = vmatprep.mubr.msk.bf16.mxu1 %vm72_vm0, %v3056_v12 }
 0xa0a   :  { %v2582_v35 = vpop.f32.mrb[16].mxu1 }
 0xa0b   :  { %v1092_v36 = vadd.f32 %v2582_v35, %v2342_v57  ;;  %v1083_v37 = vpop.f32.mrb[17].mxu1 }
 0xa0c   :  { %v1084_v38 = vadd.f32 %v2342_v57, %v1083_v37  ;;  %v2583_v17 = vpop.f32.mrb[18].mxu1 }
 0xa0d   :  { %1100 = vst [vmem:[%s3811_s11 + $0x20] sm:$0xff] %v1092_v36  ;;  %v1095_v21 = vadd.f32 %v2583_v17, %v2342_v57  ;;  %v1086_v33 = vpop.f32.mrb[19].mxu1  ;;  %v2828_v17 = vld [vmem:[%s3804_s4 + $0x18] sm:$0xff]  }
 0xa0e   :  { %1098 = vst [vmem:[%s3811_s11] sm:$0xff] %v1084_v38  ;;  %v1087_v12 = vadd.f32 %v2342_v57, %v1086_v33  ;;  %v2606_v13 = vpop.f32.mrb[20].mxu0  ;;  %v2827_v57 = vld [vmem:[%s3803_s3] sm:$0x3f]  }
 0xa0f   :  { %1101 = vst [vmem:[%s3811_s11 + $0x28] sm:$0xff] %v1095_v21  ;;  %v1404_v15 = vmul.f32 0.95, %v2606_v13  ;;  %v1387_v41 = vpop.f32.mrb[21].mxu0  ;;  %2679 = vmatprep.subr.msk.bf16.mxu0 %vm418_vm1, %v2827_v57  ;;  %v1525_v36 = vsel %vm418_vm1, %v2827_v57, 0 }
 0xa10   :  { %1099 = vst [vmem:[%s3811_s11 + $0x8] sm:$0xff] %v1087_v12  ;;  %v1402_v42 = vmul.f32 0.95, %v1387_v41  ;;  %v2607_v44 = vpop.f32.mrb[22].mxu0  ;;  %2617 = vmatpush3.bf16.msra.mxu0 %v1525_v36 }
 0xa11   :  { %v1405_v45 = vmul.f32 0.95, %v2607_v44  ;;  %v1390_v46 = vpop.f32.mrb[23].mxu0  ;;  %v1408_v51 = vadd.f32 %v1404_v15, %v3417_v40  ;;  %v2829_v44 = vld [vmem:[%s3804_s4 + $0x20] sm:$0xff]  }
 0xa12   :  { %v1403_v48 = vmul.f32 0.95, %v1390_v46  ;;  %v2590_v49 = vpop.f32.mrb[20].mxu1  ;;  %v1406_v14 = vadd.f32 %v1402_v42, %v3408_v20 }
 0xa13   :  { %v1409_v52 = vadd.f32 %v1405_v45, %v3423_v43  ;;  %v1242_v54 = vmul.f32 0.95, %v2590_v49  ;;  %v1225_v55 = vpop.f32.mrb[21].mxu1 }
 0xa14   :  { %v1407_v31 = vadd.f32 %v1403_v48, %v3411_v25  ;;  %v1240_v1 = vmul.f32 0.95, %v1225_v55  ;;  %v2591_v58 = vpop.f32.mrb[22].mxu1 }
 0xa15   :  { %v1243_v0 = vmul.f32 0.95, %v2591_v58  ;;  %v1228_v60 = vpop.f32.mrb[23].mxu1  ;;  %v2747_v61 = vpack.i.bf16 %v1409_v52, %v1408_v51  ;;  %v1411_v62 = vpack.c.bf16 %v1409_v52, %v1408_v51  ;;  %v1246_v8 = vadd.f32 %v1242_v54, %v3426_v47 }
 0xa16   :  { %v1241_v63 = vmul.f32 0.95, %v1228_v60  ;;  %v2752_v3 = vpack.i.bf16 %v1407_v31, %v1406_v14  ;;  %v1410_v7 = vpack.c.bf16 %v1407_v31, %v1406_v14  ;;  %v1244_v22 = vadd.f32 %v1240_v1, %v3429_v50 }
 0xa17   :  { %v1247_v11 = vadd.f32 %v1243_v0, %v3434_v59  ;;  %2748 = vrot.lane.b32.xlu1 %v2747_v61, %s2934_s24 }
 0xa18   :  { %v1245_v24 = vadd.f32 %v1241_v63, %v1186_v5  ;;  %2753 = vrot.lane.b32.xlu0 %v2752_v3, %s2934_s24 }
 0xa19   :  { %v2757_v26 = vpack.i.bf16 %v1247_v11, %v1246_v8  ;;  %v1249_v27 = vpack.c.bf16 %v1247_v11, %v1246_v8 }
 0xa1a   :  { %v1248_v28 = vpack.c.bf16 %v1245_v24, %v1244_v22  ;;  %v2762_v29 = vpack.i.bf16 %v1245_v24, %v1244_v22 }
 0xa1b   :  { %2758 = vrot.lane.b32.xlu1 %v2757_v26, %s2933_s23 }
 0xa1c   :  { %2592 = vmatprep.subr.bf16.mxu1 %v1248_v28 }
 0xa1d   :  { %2593 = vmatpush3.bf16.msra.mxu1 %v1248_v28 }
 0xa1e   :  { %2594 = vmatprep.subr.bf16.mxu1 %v1249_v27 }
 0xa1f   :  { %2763 = vrot.lane.b32.xlu1 %v2762_v29, %s2933_s23 }
 0xa21   :  { %2595 = vmatpush3.bf16.msra.mxu1 %v1249_v27 }
 0xa22   :  { %2608 = vmatprep.subr.bf16.mxu1 %v1410_v7 }
 0xa24   :  { %2597 = vmatmul.mubr.msk.bf16.vlgmr.msra.gmra.mrb[24].mxu1 %vm72_vm0, %v3449_v2 }
 0xa25   :  { %2609 = vmatpush3.bf16.msra.mxu1 %v1410_v7  ;;  %2612 = vmatprep.mubr.msk.bf16.mxu1 %vm72_vm0, %v3456_v56 }
 0xa26   :  { %2610 = vmatprep.subr.bf16.mxu1 %v1411_v62 }
 0xa29   :  { %2611 = vmatpush3.bf16.msra.mxu1 %v1411_v62 }
 0xa2a   :  { %2622 = vmatprep.subr.bf16.mxu1 %v2824_v4 }
 0xa2c   :  { %2613 = vmatmul.mubr.msk.bf16.vlgmr.msra.gmra.mrb[28].mxu1 %vm72_vm0, %v3449_v2 }
 0xa2d   :  { %2623 = vmatpush3.bf16.msra.mxu1 %v2824_v4 }
 0xa2e   :  { %2624 = vmatprep.subr.bf16.mxu1 %v2825_v10 }
 0xa31   :  { %2625 = vmatpush3.bf16.msra.mxu1 %v2825_v10 }
 0xa32   :  { %2626 = vmatprep.subr.bf16.mxu1 %v2826_v53 }
 0xa35   :  { %2627 = vmatpush3.bf16.msra.mxu1 %v2826_v53 }
 0xa36   :  { %2628 = vmatprep.subr.bf16.mxu1 %v2828_v17 }
 0xa39   :  { %2629 = vmatpush3.bf16.msra.mxu1 %v2828_v17 }
 0xa3a   :  { %2630 = vmatprep.subr.bf16.mxu1 %v2829_v44 }
 0xa3d   :  { %2631 = vmatpush3.bf16.msra.mxu1 %v2829_v44 }
 0xa8a   :  { %v2754_v62 = vpop.permute.xlu0 %2753 }
 0xaf7   :  { %v2598_v35 = vpop.f32.mrb[24].mxu1 }
 0xaf8   :  { %v1301_v37 = vmul.f32 0.95, %v2598_v35  ;;  %v1284_v38 = vpop.f32.mrb[25].mxu1 }
 0xaf9   :  { %v1299_v21 = vmul.f32 0.95, %v1284_v38  ;;  %v2599_v33 = vpop.f32.mrb[26].mxu1  ;;  %v2756_v38 = vunpack.i.h.bf16 %v2754_v62 }
 0xafa   :  { %v1302_v12 = vmul.f32 0.95, %v2599_v33  ;;  %v1287_v13 = vpop.f32.mrb[27].mxu1  ;;  %v1305_v41 = vadd.f32 %v1301_v37, %v3426_v47  ;;  %v2830_v47 = vld [vmem:[%s3804_s4 + $0x28] sm:$0xff]  }
 0xafb   :  { %v1300_v15 = vmul.f32 0.95, %v1287_v13  ;;  %v1303_v45 = vadd.f32 %v1299_v21, %v3429_v50  ;;  %2632 = vmatprep.subr.bf16.mxu1 %v2830_v47 }
 0xafc   :  { %v1306_v42 = vadd.f32 %v1302_v12, %v3434_v59  ;;  %2633 = vmatpush3.bf16.msra.mxu1 %v2830_v47  ;;  %v1502_v12 = vsel %vm72_vm0, %v3361_v23, %v2756_v38 }
 0xafd   :  { %v1304_v46 = vadd.f32 %v1300_v15, %v1186_v5 }
 0xafe   :  { %v2767_v48 = vpack.i.bf16 %v1306_v42, %v1305_v41 }
 0xaff   :  { %v2614_v49 = vpop.f32.mrb[28].mxu1  ;;  %v2772_v51 = vpack.i.bf16 %v1304_v46, %v1303_v45 }
 0xb00   :  { %v1463_v52 = vmul.f32 0.95, %v2614_v49  ;;  %2768 = vrot.lane.b32.xlu1 %v2767_v48, %s2935_s19  ;;  %v1446_v54 = vpop.f32.mrb[29].mxu1 }
 0xb01   :  { %v1461_v55 = vmul.f32 0.95, %v1446_v54  ;;  %v2615_v59 = vpop.f32.mrb[30].mxu1  ;;  %2773 = vrot.lane.b32.xlu0 %v2772_v51, %s2935_s19 }
 0xb02   :  { %v1464_v14 = vmul.f32 0.95, %v2615_v59  ;;  %v1449_v50 = vpop.f32.mrb[31].mxu1  ;;  %v1467_v1 = vadd.f32 %v1463_v52, %v3417_v40  ;;  %v2749_v40 = vpop.permute.xlu1 %2748 }
 0xb03   :  { %v1462_v31 = vmul.f32 0.95, %v1449_v50  ;;  %v1465_v5 = vadd.f32 %v1461_v55, %v3408_v20  ;;  %v2751_v21 = vunpack.i.h.bf16 %v2749_v40  ;;  %v2750_v33 = vunpack.i.l.bf16 %v2749_v40 }
 0xb04   :  { %v1468_v58 = vadd.f32 %v1464_v14, %v3423_v43  ;;  %1722 = vrot.lane.b32.xlu1 %v3358_v19, %s2934_s24 }
 0xb05   :  { %v1466_v0 = vadd.f32 %v1462_v31, %v3411_v25  ;;  %v1504_v48 = vsel %vm72_vm0, %v3382_v9, %v2751_v21  ;;  %v1503_v49 = vsel %vm72_vm0, %v3370_v6, %v2750_v33 }
 0xb06   :  { %v2782_v60 = vpack.i.bf16 %v1468_v58, %v1467_v1  ;;  %v2759_v43 = vpop.permute.xlu1 %2758 }
 0xb07   :  { %v2777_v61 = vpack.i.bf16 %v1466_v0, %v1465_v5  ;;  %v2761_v25 = vunpack.i.h.bf16 %v2759_v43  ;;  %v2760_v63 = vunpack.i.l.bf16 %v2759_v43 }
 0xb08   :  { %1726 = vrot.lane.b32.xlu1 %v3370_v6, %s2934_s24 }
 0xb09   :  { %2778 = vrot.lane.b32.xlu0 %v2777_v61, %s2936_s22  ;;  %v1342_v26 = vsel %vm227_vm2, %v3380_v34, %v2761_v25  ;;  %v1341_v27 = vsel %vm227_vm2, %v3375_v32, %v2760_v63  ;;  %v2755_v32 = vunpack.i.l.bf16 %v2754_v62 }
 0xb0a   :  { %v2764_v20 = vpop.permute.xlu1 %2763 }
 0xb0b   :  { %v2766_v3 = vunpack.i.h.bf16 %v2764_v20  ;;  %v2765_v7 = vunpack.i.l.bf16 %v2764_v20  ;;  %v1501_v13 = vsel %vm72_vm0, %v3358_v19, %v2755_v32 }
 0xb0d   :  { %2783 = vrot.lane.b32.xlu0 %v2782_v60, %s2936_s22  ;;  %v1340_v4 = vsel %vm227_vm2, %v3344_v18, %v2766_v3  ;;  %v1339_v10 = vsel %vm227_vm2, %v3339_v30, %v2765_v7 }
 0xb11   :  { %1724 = vrot.lane.b32.xlu0 %v3361_v23, %s2934_s24 }
 0xb15   :  { %1728 = vrot.lane.b32.xlu0 %v3382_v9, %s2934_s24 }
 0xb72   :  { %v2769_v8 = vpop.permute.xlu1 %2768 }
 0xb73   :  { %v2771_v11 = vunpack.i.h.bf16 %v2769_v8  ;;  %v2770_v22 = vunpack.i.l.bf16 %v2769_v8  ;;  %v2774_v24 = vpop.permute.xlu0 %2773 }
 0xb74   :  { %v2776_v28 = vunpack.i.h.bf16 %v2774_v24  ;;  %v2775_v29 = vunpack.i.l.bf16 %v2774_v24 }
 0xb75   :  { %v1346_v53 = vsel %vm232_vm3, %v1342_v26, %v2771_v11  ;;  %v1345_v57 = vsel %vm232_vm3, %v1341_v27, %v2770_v22 }
 0xb76   :  { %v1344_v35 = vsel %vm232_vm3, %v1340_v4, %v2776_v28  ;;  %v1343_v36 = vsel %vm232_vm3, %v1339_v10, %v2775_v29  ;;  %v1348_v37 = vpack.c.bf16 %v1346_v53, %v1345_v57  ;;  %v1723_v4 = vpop.permute.xlu1 %1722 }
 0xb77   :  { %v1347_v34 = vpack.c.bf16 %v1344_v35, %v1343_v36 }
 0xb79   :  { %2618 = vmatprep.mubr.msk.bf16.mxu0 %vm411_vm4, %v1347_v34 }
 0xb7a   :  { %2619 = vmatmul.mubr.msk.bf16.vlgmr.msra.gmra.mrb[24].mxu0 %vm411_vm4, %v1348_v37  ;;  %v1727_v35 = vpop.permute.xlu1 %1726 }
 0xb7b   :  { %v2779_v18 = vpop.permute.xlu0 %2778  ;;  %2642 = vmatprep.mubr.msk.bf16.mxu0 %vm72_vm0, %v3456_v56 }
 0xb7c   :  { %v2781_v30 = vunpack.i.h.bf16 %v2779_v18  ;;  %v2780_v17 = vunpack.i.l.bf16 %v2779_v18 }
 0xb7e   :  { %v1506_v15 = vsel %vm397_vm5, %v1502_v12, %v2781_v30  ;;  %v1505_v41 = vsel %vm397_vm5, %v1501_v13, %v2780_v17 }
 0xb7f   :  { %v1509_v42 = vpack.c.bf16 %v1506_v15, %v1505_v41  ;;  %v2784_v44 = vpop.permute.xlu0 %2783 }
 0xb80   :  { %v2786_v45 = vunpack.i.h.bf16 %v2784_v44  ;;  %v2785_v46 = vunpack.i.l.bf16 %v2784_v44 }
 0xb81   :  { %2634 = vmatprep.mubr.msk.bf16.mxu1 %vm519_vm6, %v1509_v42 }
 0xb82   :  { %v1508_v51 = vsel %vm397_vm5, %v1504_v48, %v2786_v45  ;;  %v1507_v52 = vsel %vm397_vm5, %v1503_v49, %v2785_v46 }
 0xb83   :  { %v1510_v54 = vpack.c.bf16 %v1508_v51, %v1507_v52 }
 0xb85   :  { %2635 = vmatmul.mubr.msk.bf16.vlgmr.msra.gmra.mrb[32].mxu1 %vm519_vm6, %v1510_v54 }
 0xc4d   :  { %v3534_v47 = vpop.f32.mrb[24].mxu0 }
 0xc4e   :  { %v3536_v55 = vpop.f32.mrb[25].mxu0 }
 0xc4f   :  { %v3538_v59 = vpop.f32.mrb[26].mxu0 }
 0xc50   :  { %v3540_v14 = vpop.f32.mrb[27].mxu0 }
 0xc58   :  { %v2636_v50 = vpop.f32.mrb[32].mxu1 }
 0xc59   :  { %v1681_v31 = vadd.f32 %v2636_v50, %v3534_v47  ;;  %v1664_v1 = vpop.f32.mrb[33].mxu1 }
 0xc5a   :  { %v1679_v58 = vadd.f32 %v1664_v1, %v3536_v55  ;;  %v2637_v5 = vpop.f32.mrb[34].mxu1 }
 0xc5b   :  { %v1692_v0 = vadd.f32 %v3199_v16, %v1681_v31  ;;  %v1682_v60 = vadd.f32 %v2637_v5, %v3538_v59  ;;  %v1667_v61 = vpop.f32.mrb[35].mxu1 }
 0xc5c   :  { %v1690_v40 = vadd.f32 %v3199_v16, %v1679_v58  ;;  %v1680_v43 = vadd.f32 %v1667_v61, %v3540_v14 }
 0xc5d   :  { %v2370_v20 = vmul.f32 -1.442695, %v1692_v0  ;;  %v1693_v62 = vadd.f32 %v3199_v16, %v1682_v60 }
 0xc5e   :  { %v2368_v25 = vmul.f32 -1.442695, %v1690_v40  ;;  %v1691_v63 = vadd.f32 %v3199_v16, %v1680_v43  ;;  %v1725_v16 = vpop.permute.xlu0 %1724 }
 0xc5f   :  { %2863 = vpow2.f32 %v2370_v20  ;;  %v2371_v3 = vmul.f32 -1.442695, %v1693_v62 }
 0xc60   :  { %2865 = vpow2.f32 %v2368_v25  ;;  %v2369_v7 = vmul.f32 -1.442695, %v1691_v63 }
 0xc61   :  { %2867 = vpow2.f32 %v2371_v3 }
 0xc62   :  { %2869 = vpow2.f32 %v2369_v7  ;;  %v1729_v36 = vpop.permute.xlu0 %1728 }
 0xc69   :  { %v2864_v8 = vpop.eup %2863 }
 0xc6a   :  { %v2866_v11 = vpop.eup %2865  ;;  %v1708_v22 = vadd.f32 1.0, %v2864_v8 }
 0xc6b   :  { %v2868_v24 = vpop.eup %2867  ;;  %v1706_v26 = vadd.f32 1.0, %v2866_v11  ;;  %v2831_v11 = vld [vmem:[%s3806_s6] sm:$0xff]  }
 0xc6c   :  { %v2870_v27 = vpop.eup %2869  ;;  %2871 = vrcp.f32 %v1708_v22  ;;  %v1709_v28 = vadd.f32 1.0, %v2868_v24  ;;  %v2832_v22 = vld [vmem:[%s3806_s6 + $0x8] sm:$0xff]  }
 0xc6d   :  { %2873 = vrcp.f32 %v1706_v26  ;;  %v1707_v29 = vadd.f32 1.0, %v2870_v27 }
 0xc6e   :  { %2875 = vrcp.f32 %v1709_v28  ;;  %v2834_v28 = vld [vmem:[%s3806_s6 + $0x18] sm:$0xff]  }
 0xc6f   :  { %2877 = vrcp.f32 %v1707_v29  ;;  %v2835_v29 = vld [vmem:[%s3806_s6 + $0x20] sm:$0xff]  }
 0xc76   :  { %v3550_v10 = vpop.eup %2871 }
 0xc77   :  { %v3552_v53 = vpop.eup %2873  ;;  %v3559_v37 = vmul.f32 %v3550_v10, %v1727_v35 }
 0xc78   :  { %v3554_v57 = vpop.eup %2875  ;;  %v3565_v32 = vmul.f32 %v3552_v53, %v1723_v4  ;;  %v2836_v4 = vld [vmem:[%s3806_s6 + $0x28] sm:$0xff]  }
 0xc79   :  { %v3556_v34 = vpop.eup %2877  ;;  %v3562_v38 = vmul.f32 %v3554_v57, %v1729_v36  ;;  %v1740_v5 = vmul.f32 0.05, %v3559_v37 }
 0xc7a   :  { %v3568_v18 = vmul.f32 %v3556_v34, %v1725_v16  ;;  %v1738_v52 = vmul.f32 0.05, %v3565_v32 }
 0xc7b   :  { %v1743_v30 = vpack.c.bf16 %v3562_v38, %v3559_v37  ;;  %v2792_v17 = vpack.i.bf16 %v3562_v38, %v3559_v37  ;;  %v1741_v0 = vmul.f32 0.05, %v3562_v38 }
 0xc7c   :  { %v1742_v21 = vpack.c.bf16 %v3568_v18, %v3565_v32  ;;  %v2787_v33 = vpack.i.bf16 %v3568_v18, %v3565_v32 }
 0xc7d   :  { %1748 = vrot.lane.b32.xlu0 %v1743_v30, %s2937_s5 }
 0xc7e   :  { %1746 = vrot.lane.b32.xlu1 %v1742_v21, %s2937_s5 }
 0xcef   :  { %v1749_v13 = vpop.permute.xlu0 %1748 }
 0xcf0   :  { %v1747_v12 = vpop.permute.xlu1 %1746 }
 0xcf1   :  { %2638 = vmatprep.subr.bf16.mxu0 %v1747_v12 }
 0xcf2   :  { %2639 = vmatpush3.bf16.msra.mxu0 %v1747_v12 }
 0xcf3   :  { %2640 = vmatprep.subr.bf16.mxu0 %v1749_v13 }
 0xcf6   :  { %2641 = vmatpush3.bf16.msra.mxu0 %v1749_v13 }
 0xcf9   :  { %2643 = vmatmul.mubr.msk.bf16.vlgmr.msra.gmra.mrb[28].mxu0 %vm72_vm0, %v3449_v2 }
 0xcfa   :  { %2650 = vmatprep.mubr.msk.bf16.mxu0 %vm72_vm0, %v3456_v56  ;;  %v1739_v56 = vmul.f32 0.05, %v3568_v18 }
 0xdcc   :  { %v2644_v15 = vpop.f32.mrb[28].mxu0 }
 0xdcd   :  { %v1786_v41 = vpop.f32.mrb[29].mxu0  ;;  %v1803_v48 = vmul.f32 0.95, %v2644_v15 }
 0xdce   :  { %v1801_v42 = vmul.f32 0.95, %v1786_v41  ;;  %v2645_v44 = vpop.f32.mrb[30].mxu0 }
 0xdcf   :  { %v1789_v45 = vpop.f32.mrb[31].mxu0  ;;  %v1804_v49 = vmul.f32 0.95, %v2645_v44 }
 0xdd0   :  { %v1802_v46 = vmul.f32 0.95, %v1789_v45  ;;  %1809 = vrot.lane.b32.xlu1 %v1801_v42, %s2934_s24 }
 0xdd2   :  { %1811 = vrot.lane.b32.xlu0 %v1802_v46, %s2934_s24 }
 0xdd4   :  { %1813 = vrot.lane.b32.xlu1 %v1803_v48, %s2934_s24 }
 0xdd6   :  { %1815 = vrot.lane.b32.xlu0 %v1804_v49, %s2934_s24 }
 0xe42   :  { %v1810_v51 = vpop.permute.xlu1 %1809 }
 0xe43   :  { %v3590_v50 = vadd.f32 %v1810_v51, %v1738_v52 }
 0xe44   :  { %v1812_v54 = vpop.permute.xlu0 %1811 }
 0xe45   :  { %v3592_v31 = vadd.f32 %v1812_v54, %v1739_v56 }
 0xe46   :  { %v1814_v1 = vpop.permute.xlu1 %1813 }
 0xe47   :  { %v1825_v58 = vpack.c.bf16 %v3592_v31, %v3590_v50  ;;  %v3598_v61 = vadd.f32 %v1814_v1, %v1740_v5 }
 0xe48   :  { %v1816_v60 = vpop.permute.xlu0 %1815 }
 0xe49   :  { %v3600_v40 = vadd.f32 %v1816_v60, %v1741_v0  ;;  %1829 = vrot.lane.b32.xlu1 %v1825_v58, %s2937_s5 }
 0xe4b   :  { %v1826_v43 = vpack.c.bf16 %v3600_v40, %v3598_v61 }
 0xe4d   :  { %1831 = vrot.lane.b32.xlu0 %v1826_v43, %s2937_s5 }
 0xebb   :  { %v1830_v20 = vpop.permute.xlu1 %1829 }
 0xebc   :  { %2646 = vmatprep.subr.bf16.mxu0 %v1830_v20 }
 0xebd   :  { %2647 = vmatpush3.bf16.msra.mxu0 %v1830_v20 }
 0xebf   :  { %v1832_v62 = vpop.permute.xlu0 %1831 }
 0xec0   :  { %2648 = vmatprep.subr.bf16.mxu0 %v1832_v62 }
 0xec1   :  { %2649 = vmatpush3.bf16.msra.mxu0 %v1832_v62 }
 0xec2   :  { %2654 = vmatprep.subr.bf16.mxu0 %v2831_v11 }
 0xec4   :  { %2651 = vmatmul.mubr.msk.bf16.vlgmr.msra.gmra.mrb[32].mxu0 %vm72_vm0, %v3449_v2  ;;  %v2833_v2 = vld [vmem:[%s3806_s6 + $0x10] sm:$0xff]  }
 0xec5   :  { %2655 = vmatpush3.bf16.msra.mxu0 %v2831_v11 }
 0xec6   :  { %2656 = vmatprep.subr.bf16.mxu0 %v2832_v22 }
 0xec9   :  { %2657 = vmatpush3.bf16.msra.mxu0 %v2832_v22 }
 0xeca   :  { %2658 = vmatprep.subr.bf16.mxu0 %v2833_v2 }
 0xecd   :  { %2659 = vmatpush3.bf16.msra.mxu0 %v2833_v2 }
 0xece   :  { %2660 = vmatprep.subr.bf16.mxu0 %v2834_v28 }
 0xed1   :  { %2661 = vmatpush3.bf16.msra.mxu0 %v2834_v28 }
 0xed2   :  { %2662 = vmatprep.subr.bf16.mxu0 %v2835_v29 }
 0xed5   :  { %2663 = vmatpush3.bf16.msra.mxu0 %v2835_v29 }
 0xed6   :  { %2664 = vmatprep.subr.bf16.mxu0 %v2836_v4 }
 0xed9   :  { %2665 = vmatpush3.bf16.msra.mxu0 %v2836_v4  ;;  %v3677_v4 = vld [vmem:[%s3801_s1] sm:$0xff] }
 0xf97   :  { %v2652_v25 = vpop.f32.mrb[32].mxu0 }
 0xf98   :  { %v1869_v63 = vpop.f32.mrb[33].mxu0  ;;  %v1886_v26 = vmul.f32 0.95, %v2652_v25 }
 0xf99   :  { %v1884_v3 = vmul.f32 0.95, %v1869_v63  ;;  %v2653_v7 = vpop.f32.mrb[34].mxu0 }
 0xf9a   :  { %v1872_v8 = vpop.f32.mrb[35].mxu0  ;;  %v1887_v27 = vmul.f32 0.95, %v2653_v7 }
 0xf9b   :  { %v1885_v24 = vmul.f32 0.95, %v1872_v8  ;;  %1892 = vrot.lane.b32.xlu1 %v1884_v3, %s2934_s24 }
 0xf9d   :  { %1894 = vrot.lane.b32.xlu0 %v1885_v24, %s2934_s24 }
 0xf9f   :  { %1896 = vrot.lane.b32.xlu1 %v1886_v26, %s2934_s24 }
 0xfa1   :  { %1898 = vrot.lane.b32.xlu0 %v1887_v27, %s2934_s24 }
 0xfa3   :  { %2788 = vrot.lane.b32.xlu1 %v2787_v33, %s2937_s5 }
 0xfa5   :  { %2793 = vrot.lane.b32.xlu0 %v2792_v17, %s2937_s5 }
0x100d   :  { %v1893_v16 = vpop.permute.xlu1 %1892 }
0x100e   :  { %v1904_v36 = vadd.f32 %v1893_v16, %v1738_v52  ;;  %v1118_v16 = vmul.f32 %v3677_v4, %v3677_v4 }
0x100f   :  { %v1895_v35 = vpop.permute.xlu0 %1894 }
0x1010   :  { %v1905_v37 = vadd.f32 %v1895_v35, %v1739_v56  ;;  %v1122_v35 = vsel %vm72_vm0, %v1118_v16, 0.0 }
0x1011   :  { %v1897_v38 = vpop.permute.xlu1 %1896 }
0x1012   :  { %v2797_v32 = vpack.i.bf16 %v1905_v37, %v1904_v36  ;;  %v1906_v30 = vadd.f32 %v1897_v38, %v1740_v5  ;;  %v3685_v36 = vld [vmem:[%s3801_s1 + $0x10] sm:$0xff]  ;;  %v3692_v38 = vld [vmem:[%s3801_s1 + $0x8] sm:$0xff] }
0x1013   :  { %v1899_v18 = vpop.permute.xlu0 %1898  ;;  %v1120_v37 = vmul.f32 %v3685_v36, %v3685_v36 }
0x1014   :  { %v1907_v17 = vadd.f32 %v1899_v18, %v1741_v0  ;;  %2798 = vrot.lane.b32.xlu1 %v2797_v32, %s2934_s24  ;;  %v1119_v32 = vmul.f32 %v3692_v38, %v3692_v38 }
0x1015   :  { %v2789_v33 = vpop.permute.xlu1 %2788  ;;  %v1128_v18 = vsel %vm72_vm0, %v1120_v37, 0.0 }
0x1016   :  { %v2802_v21 = vpack.i.bf16 %v1907_v17, %v1906_v30  ;;  %v2791_v12 = vunpack.i.h.bf16 %v2789_v33  ;;  %v2790_v13 = vunpack.i.l.bf16 %v2789_v33  ;;  %v3700_v30 = vld [vmem:[%s3801_s1 + $0x18] sm:$0xff]  ;;  %s2938_s1 = smov [#allocation2]  }
0x1017   :  { %v2794_v15 = vpop.permute.xlu0 %2793  ;;  %v1121_v17 = vmul.f32 %v3700_v30, %v3700_v30  ;;  %s2284_s30 = sshll.u32 %s2938_s1, 4  ;;  %s2285_s30 = int_to_ptr.vmem [resolvable:$true] %s2284_s30 }
0x1018   :  { %2803 = vrot.lane.b32.xlu0 %v2802_v21, %s2934_s24  ;;  %v1941_v45 = vsel %vm72_vm0, %v2791_v12, %v3592_v31  ;;  %v1940_v46 = vsel %vm72_vm0, %v2790_v13, %v3590_v50  ;;  %v2796_v48 = vunpack.i.h.bf16 %v2794_v15  ;;  %v2795_v49 = vunpack.i.l.bf16 %v2794_v15  ;;  %s2909_s4 = scalar_lea.vmem %s2285_s30, 512  ;;  %p2914_p1 = scmp.lt.s32.totalorder %s2285_s30, %s2285_s30 }
0x1019   :  { %v1125_v21 = vsel %vm72_vm0, %v1119_v32, 0.0  ;;  %v1131_v33 = vsel %vm72_vm0, %v1121_v17, 0.0  ;;  %v1134_v12 = vmul.f32 %v3358_v19, %v3358_v19  ;;  %v1135_v13 = vmul.f32 %v3361_v23, %v3361_v23  ;;  %p2910_p0 = scmp.ne.s32.totalorder %s2285_s30, %s2909_s4  ;;  %p2915_p2 = scmp.lt.s32.totalorder %s2909_s4, %s2909_s4 }
0x101a   :  { %v1943_v5 = vsel %vm72_vm0, %v2796_v48, %v3600_v40  ;;  %v1942_v0 = vsel %vm72_vm0, %v2795_v49, %v3598_v61  ;;  %v2094_v48 = vsub.f32 1.0, %v3552_v53  ;;  %v2095_v49 = vsub.f32 1.0, %v3556_v34 }
0x101b   :  { %v1138_v15 = vsel %vm72_vm0, %v1134_v12, 0.0  ;;  %p2916_p3 = por %p2915_p2, %p2914_p1 }
0x101d   :  { %p2917_p4 = pnand %p2916_p3, %p2910_p0 }
0x1086   :  { %v2799_v41 = vpop.permute.xlu1 %2798 }
0x1087   :  { %v2801_v42 = vunpack.i.h.bf16 %v2799_v41  ;;  %v2800_v44 = vunpack.i.l.bf16 %v2799_v41  ;;  %v1136_v41 = vmul.f32 %v3370_v6, %v3370_v6 }
0x1089   :  { %v1945_v51 = vsel %vm397_vm5, %v1941_v45, %v2801_v42  ;;  %v1944_v52 = vsel %vm397_vm5, %v1940_v46, %v2800_v44  ;;  %v1141_v42 = vsel %vm72_vm0, %v1135_v13, 0.0  ;;  %v1137_v44 = vmul.f32 %v3382_v9, %v3382_v9 }
0x108a   :  { %v1948_v56 = vpack.c.bf16 %v1945_v51, %v1944_v52  ;;  %v2804_v54 = vpop.permute.xlu0 %2803  ;;  %v1144_v45 = vsel %vm72_vm0, %v1136_v41, 0.0 }
0x108b   :  { %v2806_v1 = vunpack.i.h.bf16 %v2804_v54  ;;  %v2805_v58 = vunpack.i.l.bf16 %v2804_v54  ;;  %v1147_v46 = vsel %vm72_vm0, %v1137_v44, 0.0 }
0x108c   :  { %2666 = vmatprep.mubr.msk.bf16.mxu0 %vm519_vm6, %v1948_v56  ;;  %v2090_v56 = vmul.f32 %v3552_v53, %v3358_v19  ;;  %v2093_v53 = vmul.f32 %v3554_v57, %v3382_v9 }
0x108d   :  { %v1946_v50 = vsel %vm397_vm5, %v1942_v0, %v2805_v58  ;;  %v1947_v31 = vsel %vm397_vm5, %v1943_v5, %v2806_v1  ;;  %v2091_v1 = vmul.f32 %v3556_v34, %v3361_v23  ;;  %v2096_v0 = vsub.f32 1.0, %v3550_v10 }
0x108e   :  { %v1949_v60 = vpack.c.bf16 %v1947_v31, %v1946_v50  ;;  %v2097_v31 = vsub.f32 1.0, %v3554_v57 }
0x1090   :  { %2667 = vmatmul.mubr.msk.bf16.vlgmr.msra.gmra.mrb[36].mxu0 %vm519_vm6, %v1949_v60 }
0x1163   :  { %v2668_v43 = vpop.f32.mrb[36].mxu0 }
0x1164   :  { %2061 = vrot.lane.b32.xlu1 %v2668_v43, %s2936_s22  ;;  %v2038_v20 = vpop.f32.mrb[37].mxu0 }
0x1165   :  { %v2669_v62 = vpop.f32.mrb[38].mxu0 }
0x1166   :  { %v2041_v25 = vpop.f32.mrb[39].mxu0 }
0x1167   :  { %2059 = vrot.lane.b32.xlu0 %v2041_v25, %s2936_s22 }
0x1168   :  { %2057 = vrot.lane.b32.xlu1 %v2038_v20, %s2936_s22  ;;  %v2092_v20 = vmul.f32 %v3550_v10, %v3370_v6 }
0x116b   :  { %2063 = vrot.lane.b32.xlu0 %v2669_v62, %s2936_s22 }
0x116c   :  { %2079 = vrot.lane.b32.xlu1 %v3321_v39, %s2936_s22  ;;  %v2837_v39 = vld [vmem:[%s3808_s8] sm:$0xff]  }
0x116d   :  { %2670 = vmatprep.subr.bf16.mxu1 %v2837_v39 }
0x116e   :  { %2671 = vmatpush3.bf16.msra.mxu1 %v2837_v39  ;;  %v1104_v39 = vmul.f32 %v3685_v36, %v3370_v6 }
0x11d6   :  { %v2062_v61 = vpop.permute.xlu1 %2061 }
0x11d7   :  { %v2071_v24 = vadd.f32 %v3534_v47, %v2062_v61 }
0x11d9   :  { %v2060_v40 = vpop.permute.xlu0 %2059 }
0x11da   :  { %v2058_v63 = vpop.permute.xlu1 %2057  ;;  %v2070_v3 = vadd.f32 %v2060_v40, %v3540_v14 }
0x11db   :  { %v2069_v7 = vadd.f32 %v2058_v63, %v3536_v55  ;;  %v2838_v55 = vld [vmem:[%s3808_s8 + $0x8] sm:$0xff]  }
0x11dc   :  { %2672 = vmatprep.subr.bf16.mxu1 %v2838_v55 }
0x11dd   :  { %v2064_v8 = vpop.permute.xlu0 %2063  ;;  %2673 = vmatpush3.bf16.msra.mxu1 %v2838_v55  ;;  %v1105_v55 = vmul.f32 %v3700_v30, %v3382_v9 }
0x11de   :  { %v2072_v11 = vadd.f32 %v3538_v59, %v2064_v8  ;;  %v2080_v22 = vpop.permute.xlu1 %2079 }
0x11df   :  { %v2082_v26 = vadd.f32 %v2080_v22, %v2069_v7  ;;  %v2083_v2 = vadd.f32 %v2080_v22, %v2070_v3  ;;  %v2084_v27 = vadd.f32 %v2080_v22, %v2071_v24  ;;  %v1102_v24 = vmul.f32 %v3677_v4, %v3358_v19 }
0x11e0   :  { %v2085_v28 = vadd.f32 %v2080_v22, %v2072_v11 }
0x11e1   :  { %2879 = vtanh.f32 %v2082_v26 }
0x11e2   :  { %2881 = vtanh.f32 %v2083_v2  ;;  %v1103_v2 = vmul.f32 %v3692_v38, %v3361_v23 }
0x11e3   :  { %2883 = vtanh.f32 %v2084_v27  ;;  %v1106_v27 = vsel %vm72_vm0, %v1102_v24, 0.0 }
0x11e4   :  { %2885 = vtanh.f32 %v2085_v28  ;;  %v1109_v28 = vsel %vm72_vm0, %v1103_v2, 0.0 }
0x11eb   :  { %v2880_v47 = vpop.eup %2879 }
0x11ec   :  { %v2882_v59 = vpop.eup %2881  ;;  %2102 = vrot.lane.b32.xlu0 %v2880_v47, %s2936_s22  ;;  %v1112_v47 = vsel %vm72_vm0, %v1104_v39, 0.0 }
0x11ed   :  { %2104 = vrot.lane.b32.xlu1 %v2882_v59, %s2936_s22  ;;  %v2884_v14 = vpop.eup %2883 }
0x11ee   :  { %v2886_v29 = vpop.eup %2885 }
0x11f0   :  { %2106 = vrot.lane.b32.xlu0 %v2884_v14, %s2936_s22  ;;  %v1115_v14 = vsel %vm72_vm0, %v1105_v55, 0.0 }
0x11f1   :  { %2108 = vrot.lane.b32.xlu1 %v2886_v29, %s2936_s22 }
0x120f   :  { %1123 = vadd.xlane.f32.xlu0 %v1122_v35 }
0x1213   :  { %1129 = vadd.xlane.f32.xlu0 %v1128_v18 }
0x1215   :  { %1126 = vadd.xlane.f32.xlu1 %v1125_v21 }
0x1217   :  { %1132 = vadd.xlane.f32.xlu0 %v1131_v33 }
0x1219   :  { %1139 = vadd.xlane.f32.xlu1 %v1138_v15 }
0x121b   :  { %1142 = vadd.xlane.f32.xlu0 %v1141_v42 }
0x121d   :  { %1145 = vadd.xlane.f32.xlu1 %v1144_v45 }
0x121f   :  { %1148 = vadd.xlane.f32.xlu0 %v1147_v46 }
0x125e   :  { %v2103_v51 = vpop.permute.xlu0 %2102 }
0x125f   :  { %v2105_v52 = vpop.permute.xlu1 %2104  ;;  %v2114_v54 = vmul.f32 %v2103_v51, %v2094_v48 }
0x1260   :  { %v2115_v58 = vmul.f32 %v2105_v52, %v2095_v49 }
0x1261   :  { %v2118_v5 = vadd.f32 %v2114_v54, %v2090_v56 }
0x1262   :  { %v2119_v50 = vadd.f32 %v2115_v58, %v2091_v1  ;;  %v2107_v60 = vpop.permute.xlu0 %2106 }
0x1263   :  { %2275 = vst.msk [vmem:[#allocation2] sm:$0xff] %vm72_vm0, %v2118_v5  ;;  %v2109_v43 = vpop.permute.xlu1 %2108  ;;  %v2116_v62 = vmul.f32 %v2107_v60, %v2096_v0  ;;  %v2223_v8 = vmul.f32 %v2118_v5, %v2118_v5  ;;  %v2207_v59 = vmul.f32 %v2118_v5, %v3358_v19 }
0x1264   :  { %2276 = vst.msk [vmem:[#allocation2 + $0x8] sm:$0xff] %vm72_vm0, %v2119_v50  ;;  %v2117_v34 = vmul.f32 %v2109_v43, %v2097_v31  ;;  %v2122_v25 = vpack.c.bf16 %v2119_v50, %v2118_v5  ;;  %v2224_v11 = vmul.f32 %v2119_v50, %v2119_v50  ;;  %v2208_v29 = vmul.f32 %v2119_v50, %v3361_v23 }
0x1265   :  { %v2120_v61 = vadd.f32 %v2116_v62, %v2092_v20  ;;  %v2227_v22 = vsel %vm72_vm0, %v2223_v8, 0.0  ;;  %v2211_v4 = vsel %vm72_vm0, %v2207_v59, 0.0 }
0x1266   :  { %v2121_v40 = vadd.f32 %v2117_v34, %v2093_v53  ;;  %2674 = vmatprep.mubr.msk.bf16.mxu1 %vm72_vm0, %v2122_v25  ;;  %v2230_v26 = vsel %vm72_vm0, %v2224_v11, 0.0  ;;  %v2214_v35 = vsel %vm72_vm0, %v2208_v29, 0.0 }
0x1267   :  { %2277 = vst.msk [vmem:[#allocation2 + $0x10] sm:$0xff] %vm72_vm0, %v2120_v61  ;;  %v2225_v63 = vmul.f32 %v2120_v61, %v2120_v61  ;;  %v2209_v16 = vmul.f32 %v2120_v61, %v3370_v6 }
0x1268   :  { %2278 = vst.msk [vmem:[#allocation2 + $0x18] sm:$0xff] %vm72_vm0, %v2121_v40  ;;  %v2123_v3 = vpack.c.bf16 %v2121_v40, %v2120_v61  ;;  %v2226_v7 = vmul.f32 %v2121_v40, %v2121_v40  ;;  %v2210_v36 = vmul.f32 %v2121_v40, %v3382_v9 }
0x1269   :  { %v2233_v10 = vsel %vm72_vm0, %v2225_v63, 0.0  ;;  %v2217_v37 = vsel %vm72_vm0, %v2209_v16, 0.0 }
0x126a   :  { %2675 = vmatmul.mubr.msk.bf16.vlgmr.msra.gmra.mrb[36].mxu1 %vm72_vm0, %v2123_v3  ;;  %v2236_v57 = vsel %vm72_vm0, %v2226_v7, 0.0  ;;  %2234 = vadd.xlane.f32.xlu1 %v2233_v10  ;;  %v2220_v19 = vsel %vm72_vm0, %v2210_v36, 0.0 }
0x126b   :  { %2237 = vadd.xlane.f32.xlu0 %v2236_v57 }
0x126e   :  { %2228 = vadd.xlane.f32.xlu1 %v2227_v22 }
0x126f   :  { %2231 = vadd.xlane.f32.xlu0 %v2230_v26 }
0x1272   :  { %1107 = vadd.xlane.f32.xlu1 %v1106_v27 }
0x1273   :  { %1110 = vadd.xlane.f32.xlu0 %v1109_v28 }
0x1276   :  { %1113 = vadd.xlane.f32.xlu1 %v1112_v47 }
0x1277   :  { %1116 = vadd.xlane.f32.xlu0 %v1115_v14 }
0x127a   :  { %2212 = vadd.xlane.f32.xlu1 %v2211_v4 }
0x127b   :  { %2215 = vadd.xlane.f32.xlu0 %v2214_v35 }
0x127e   :  { %2218 = vadd.xlane.f32.xlu1 %v2217_v37 }
0x127f   :  { %2221 = vadd.xlane.f32.xlu0 %v2220_v19 }
0x1280   :  { %2920 = shalt.err (!%p2917_p4)
}
0x1281   :  { %s2921_s15 = scalar_lea.hbm %s3810_s10, 512 }
0x1282   :  { %p2922_p5 = scmp.ne.s32.totalorder %s3810_s10, %s2921_s15  ;;  %p2925_p6 = scmp.lt.u32.totalorder %s2921_s15, %s3810_s10 }
0x1284   :  { %p2927_p7 = pnand %p2925_p6, %p2922_p5 }
0x1286   :  { %2930 = shalt.err (!%p2927_p7)
}
0x1287   :  { %s2939_s20 = smov 128  }
0x1288   :  { %2290 = dma.vmem_to_hbm [thread:$0]  %s2285_s30, 512, %s3810_s10, [#allocation3], %s2939_s20, %s2939_s20, %s2935_s19  }
0x129c   :  { %v1124_v23 = vpop.xlane.xlu0 %1123 }
0x12a0   :  { %v1130_v6 = vpop.xlane.xlu0 %1129 }
0x12a2   :  { %v1127_v9 = vpop.xlane.xlu1 %1126 }
0x12a4   :  { %v1133_v38 = vpop.xlane.xlu0 %1132 }
0x12a6   :  { %v1140_v32 = vpop.xlane.xlu1 %1139 }
0x12a7   :  { %v1150_v30 = vmul.f32 %v1140_v32, %v1124_v23 }
0x12a8   :  { %v1143_v18 = vpop.xlane.xlu0 %1142 }
0x12a9   :  { %v1151_v17 = vmul.f32 %v1143_v18, %v1127_v9  ;;  %v1154_v12 = vadd.f32 1e-12, %v1150_v30 }
0x12aa   :  { %v1146_v21 = vpop.xlane.xlu1 %1145 }
0x12ab   :  { %v1152_v13 = vmul.f32 %v1146_v21, %v1130_v6  ;;  %v1155_v15 = vadd.f32 1e-12, %v1151_v17  ;;  %2887 = vrsqrt.f32 %v1154_v12 }
0x12ac   :  { %v1149_v33 = vpop.xlane.xlu0 %1148 }
0x12ad   :  { %v1153_v41 = vmul.f32 %v1149_v33, %v1133_v38  ;;  %v1156_v42 = vadd.f32 1e-12, %v1152_v13  ;;  %2889 = vrsqrt.f32 %v1155_v15 }
0x12af   :  { %v1157_v44 = vadd.f32 1e-12, %v1153_v41  ;;  %2891 = vrsqrt.f32 %v1156_v42 }
0x12b1   :  { %2893 = vrsqrt.f32 %v1157_v44 }
0x12b5   :  { %v2888_v0 = vpop.eup %2887 }
0x12b7   :  { %v2890_v60 = vpop.eup %2889 }
0x12b9   :  { %v2892_v53 = vpop.eup %2891 }
0x12bb   :  { %v2894_v61 = vpop.eup %2893 }
0x12f7   :  { %v2235_v45 = vpop.xlane.xlu1 %2234 }
0x12f8   :  { %v2241_v46 = vmul.f32 %v2235_v45, %v1146_v21  ;;  %v2238_v48 = vpop.xlane.xlu0 %2237 }
0x12f9   :  { %v2242_v49 = vmul.f32 %v2238_v48, %v1149_v33 }
0x12fa   :  { %v2245_v51 = vadd.f32 1e-12, %v2241_v46 }
0x12fb   :  { %v2229_v52 = vpop.xlane.xlu1 %2228  ;;  %v2246_v58 = vadd.f32 1e-12, %v2242_v49 }
0x12fc   :  { %v2239_v56 = vmul.f32 %v2229_v52, %v1140_v32  ;;  %v2232_v54 = vpop.xlane.xlu0 %2231  ;;  %2895 = vrsqrt.f32 %v2245_v51  ;;  %v2385_v51 = vld [vmem:[%s3809_s9] ss:$0 sm:$0xff] }
0x12fd   :  { %v2240_v1 = vmul.f32 %v2232_v54, %v1143_v18 }
0x12fe   :  { %v2243_v5 = vadd.f32 1e-12, %v2239_v56 }
0x12ff   :  { %v2244_v50 = vadd.f32 1e-12, %v2240_v1  ;;  %v1108_v31 = vpop.xlane.xlu1 %1107 }
0x1300   :  { %2897 = vrsqrt.f32 %v2243_v5  ;;  %v1162_v43 = vmul.f32 %v2888_v0, %v1108_v31  ;;  %v1111_v20 = vpop.xlane.xlu0 %1110 }
0x1301   :  { %2899 = vrsqrt.f32 %v2244_v50  ;;  %v1163_v62 = vmul.f32 %v2890_v60, %v1111_v20 }
0x1302   :  { %2901 = vrsqrt.f32 %v2246_v58 }
0x1303   :  { %v1166_v34 = vadd.f32 %v1163_v62, %v1162_v43  ;;  %v1114_v25 = vpop.xlane.xlu1 %1113 }
0x1304   :  { %v1164_v40 = vmul.f32 %v2892_v53, %v1114_v25  ;;  %v1117_v63 = vpop.xlane.xlu0 %1116 }
0x1305   :  { %v1167_v3 = vrot.slane %v1166_v34, 4  ;;  %v1165_v7 = vmul.f32 %v2894_v61, %v1117_v63 }
0x1306   :  { %v2896_v22 = vpop.eup %2895 }
0x1307   :  { %v1168_v10 = vadd.f32 %v1167_v3, %v1166_v34  ;;  %v1175_v8 = vadd.f32 %v1165_v7, %v1164_v40  ;;  %v2213_v57 = vpop.xlane.xlu1 %2212 }
0x1308   :  { %v2216_v11 = vpop.xlane.xlu0 %2215 }
0x1309   :  { %v1169_v24 = vrot.slane %v1168_v10, 2  ;;  %v1176_v26 = vrot.slane %v1175_v8, 4 }
0x130a   :  { %v2898_v2 = vpop.eup %2897 }
0x130b   :  { %v2900_v27 = vpop.eup %2899  ;;  %v1170_v39 = vadd.f32 %v1169_v24, %v1168_v10  ;;  %v1177_v28 = vadd.f32 %v1176_v26, %v1175_v8  ;;  %v2251_v55 = vmul.f32 %v2898_v2, %v2213_v57  ;;  %v2219_v47 = vpop.xlane.xlu1 %2218 }
0x130c   :  { %v2902_v59 = vpop.eup %2901  ;;  %v2252_v14 = vmul.f32 %v2900_v27, %v2216_v11  ;;  %v2253_v29 = vmul.f32 %v2896_v22, %v2219_v47  ;;  %v2222_v4 = vpop.xlane.xlu0 %2221 }
0x130d   :  { %v1171_v16 = vrot.slane %v1170_v39, 1  ;;  %v1178_v35 = vrot.slane %v1177_v28, 2  ;;  %v2254_v36 = vmul.f32 %v2902_v59, %v2222_v4 }
0x130e   :  { %v2255_v37 = vadd.f32 %v2252_v14, %v2251_v55 }
0x130f   :  { %v1172_v19 = vadd.f32 %v1171_v16, %v1170_v39  ;;  %v1179_v23 = vadd.f32 %v1178_v35, %v1177_v28  ;;  %v2265_v6 = vadd.f32 %v2254_v36, %v2253_v29 }
0x1310   :  { %v2256_v9 = vrot.slane %v2255_v37, 4 }
0x1311   :  { %v1173_v38 = vmul.f32 0.0625, %v1172_v19  ;;  %v1180_v32 = vrot.slane %v1179_v23, 1  ;;  %v2266_v18 = vrot.slane %v2265_v6, 4 }
0x1312   :  { %v2257_v30 = vadd.f32 %v2256_v9, %v2255_v37 }
0x1313   :  { %1174 = vst [vmem:[%s3812_s12] sm:$0x1] %v1173_v38  ;;  %v1181_v17 = vadd.f32 %v1180_v32, %v1179_v23  ;;  %v2267_v21 = vadd.f32 %v2266_v18, %v2265_v6 }
0x1314   :  { %v2258_v33 = vrot.slane %v2257_v30, 2 }
0x1315   :  { %v1182_v12 = vmul.f32 0.0625, %v1181_v17  ;;  %v2268_v13 = vrot.slane %v2267_v21, 2 }
0x1316   :  { %v2259_v15 = vadd.f32 %v2258_v33, %v2257_v30 }
0x1317   :  { %2347 = vst [vmem:[%s3812_s12 + $0x2] sm:$0x1] %v1182_v12  ;;  %v2269_v41 = vadd.f32 %v2268_v13, %v2267_v21 }
0x1318   :  { %v2260_v42 = vrot.slane %v2259_v15, 1 }
0x1319   :  { %v2270_v44 = vrot.slane %v2269_v41, 1 }
0x131a   :  { %v2261_v45 = vadd.f32 %v2260_v42, %v2259_v15 }
0x131b   :  { %v2271_v46 = vadd.f32 %v2270_v44, %v2269_v41 }
0x131c   :  { %v2262_v48 = vmul.f32 0.0625, %v2261_v45 }
0x131d   :  { %v2272_v49 = vmul.f32 0.0625, %v2271_v46 }
0x131e   :  { %2394 = vst [vmem:[%s3812_s12 + $0x1] sm:$0x1] %v2262_v48 }
0x131f   :  { %2395 = vst [vmem:[%s3812_s12 + $0x3] sm:$0x1] %v2272_v49 }
0x133d   :  { %v2676_v52 = vpop.f32.mrb[36].mxu1 }
0x133e   :  { %v2196_v56 = vadd.f32 %v2676_v52, %v2385_v51  ;;  %v2187_v54 = vpop.f32.mrb[37].mxu1 }
0x133f   :  { %v2188_v1 = vadd.f32 %v2385_v51, %v2187_v54  ;;  %v2677_v58 = vpop.f32.mrb[38].mxu1 }
0x1340   :  { %2392 = vst [vmem:[%s3811_s11 + $0x30] sm:$0xff] %v2196_v56  ;;  %v2199_v5 = vadd.f32 %v2677_v58, %v2385_v51  ;;  %v2190_v0 = vpop.f32.mrb[39].mxu1 }
0x1341   :  { %2390 = vst [vmem:[%s3811_s11 + $0x10] sm:$0xff] %v2188_v1  ;;  %v2191_v50 = vadd.f32 %v2385_v51, %v2190_v0 }
0x1342   :  { %2393 = vst [vmem:[%s3811_s11 + $0x38] sm:$0xff] %v2199_v5 }
0x1343   :  { %2391 = vst [vmem:[%s3811_s11 + $0x18] sm:$0xff] %v2191_v50 }
0x1344   :  { %2931 = dma.done.wait [#allocation3], 512  }
0x1345   :  { %2932 = vsyncadd [#allocation3], 4294966784 }
0x1346   :  { %2302 = vsyncpa [#allocation3], 1 }

</bundles_post_ra>
